<compile_context>
chip_gen: v7x
topology: tpu7x:2x2x1
jax: 0.10.0
libtpu: 0.0.40
codegen_flags: <defaults>
</compile_context>

<pallas_src>
import functools

import jax
import jax.numpy as jnp
import numpy as np
from jax import lax
from jax.experimental import pallas as pl
from jax.experimental.pallas import tpu as pltpu

LN_EPS = 1e-5
_INV_SQRT2 = 0.7071067811865476
_LANE = 128
_SUBLANE = 8
_VMEM_LIMIT = 48 * 1024 * 1024  # fits v7x's 64 MiB physical VMEM with headroom


def _gelu_exact(x):
    # PyTorch nn.GELU() default: exact erf-based GELU.
    return 0.5 * x * (1.0 + lax.erf(x * _INV_SQRT2))


def _layernorm(h, gamma, beta):
    # One-pass statistics (single sweep for sum and sum-of-squares).
    inv_d = 1.0 / h.shape[-1]
    mu = jnp.sum(h, axis=-1, keepdims=True) * inv_d
    ms = jnp.sum(h * h, axis=-1, keepdims=True) * inv_d
    var = jnp.maximum(ms - mu * mu, 0.0)
    return (h - mu) * lax.rsqrt(var + LN_EPS) * gamma + beta


def _round_up(n, m):
    return ((n + m - 1) // m) * m


def _pick_tile(n, max_tile, align):
    """Largest tile <= max_tile that is a multiple of `align` and divides n."""
    if n <= max_tile or n % align != 0:
        return n
    t = (max_tile // align) * align
    while t > 0:
        if n % t == 0:
            return t
        t -= align
    return n


def _wspec(arr):
    """Full-array BlockSpec whose block index is constant across the grid."""
    n = arr.ndim
    return pl.BlockSpec(arr.shape, lambda *_, n=n: (0,) * n)


# ----------------------------------------------------------------------------
# Pass (a): affinities + splat_states reduction over sequence tiles.
# grid = (B, S//TS); S-tile axis is the reduction ("arbitrary") axis.
# ----------------------------------------------------------------------------
def _splat_stats_kernel(x_ref, centers_ref, c_sq_ref, nhis_ref, mask_ref,
                        wv_ref, aff_ref, ss_ref):
    x = x_ref[0]                                    # [TS, D]  f32
    centers = centers_ref[...]                      # [Kp, D]  f32

    # dist^2 = ||x||^2 + ||c||^2 - 2 x.c   (cross term on the MXU, f32)
    cross = lax.dot_general(x, centers, (((1,), (1,)), ((), ())),
                            preferred_element_type=jnp.float32)     # [TS, Kp]
    x_sq = jnp.sum(x * x, axis=-1, keepdims=True)                   # [TS, 1]
    dist_sq = jnp.maximum(x_sq + c_sq_ref[...] - 2.0 * cross, 0.0)  # [TS, Kp]

    # temperature == 1.0 -> the (1/T) power is identity; padded splats -> 0.
    aff = jnp.exp(dist_sq * nhis_ref[...]) * mask_ref[...]          # [TS, Kp]
    denom = jnp.sum(aff, axis=-1, keepdims=True) + 1e-8
    aff = aff * pl.reciprocal(denom, approx=True)
    aff_ref[0] = aff

    # splat_states accumulation:  ss += aff_tile.T @ (x_tile @ Wv.T)
    tv = lax.dot_general(x.astype(jnp.bfloat16), wv_ref[...],
                         (((1,), (1,)), ((), ())),
                         preferred_element_type=jnp.float32)        # [TS, D]
    contrib = lax.dot_general(aff.astype(jnp.bfloat16),
                              tv.astype(jnp.bfloat16),
                              (((0,), (0,)), ((), ())),
                              preferred_element_type=jnp.float32)   # [Kp, D]

    @pl.when(pl.program_id(1) == 0)
    def _init():
        ss_ref[0] = contrib

    @pl.when(pl.program_id(1) != 0)
    def _accum():
        ss_ref[0] += contrib


# ----------------------------------------------------------------------------
# Pass (b): token_out + output proj + LN1 + FFN + LN2, per (batch, S-tile).
# ----------------------------------------------------------------------------
def _layer_main_kernel(x_ref, aff_ref, ss_ref, wo_ref,
                       g1_ref, bn1_ref, w1_ref, b1_ref, w2_ref, b2_ref,
                       g2_ref, bn2_ref, out_ref):
    x = x_ref[0]                                    # [TS, D]   f32
    aff = aff_ref[0]                                # [TS, Kp]  f32
    ss = ss_ref[0]                                  # [Kp, D]   f32

    token_out = lax.dot_general(aff.astype(jnp.bfloat16),
                                ss.astype(jnp.bfloat16),
                                (((1,), (0,)), ((), ())),
                                preferred_element_type=jnp.float32)  # [TS, D]
    attn = lax.dot_general(token_out.astype(jnp.bfloat16), wo_ref[...],
                           (((1,), (1,)), ((), ())),
                           preferred_element_type=jnp.float32)       # [TS, D]
    # attention dropout: identity (eval mode)

    h = _layernorm(x + attn, g1_ref[...], bn1_ref[...])

    f = lax.dot_general(h.astype(jnp.bfloat16), w1_ref[...],
                        (((1,), (1,)), ((), ())),
                        preferred_element_type=jnp.float32) + b1_ref[...]  # [TS, F]
    f = _gelu_exact(f)
    f = lax.dot_general(f.astype(jnp.bfloat16), w2_ref[...],
                        (((1,), (1,)), ((), ())),
                        preferred_element_type=jnp.float32) + b2_ref[...]  # [TS, D]

    out_ref[0] = _layernorm(h + f, g2_ref[...], bn2_ref[...])


# ----------------------------------------------------------------------------
# Final LayerNorm + vocab projection, tiled over (batch, S-tile, V-tile).
# ----------------------------------------------------------------------------
def _final_kernel(x_ref, g_ref, b_ref, wout_ref, out_ref):
    h = _layernorm(x_ref[0], g_ref[...], b_ref[...])                  # [TS, D]
    out_ref[0] = lax.dot_general(h.astype(jnp.bfloat16), wout_ref[...],
                                 (((1,), (1,)), ((), ())),
                                 preferred_element_type=jnp.float32)  # [TS, TV]


# ----------------------------------------------------------------------------
# Wrappers
# ----------------------------------------------------------------------------
def splat_layer_forward(x, lp, *, ts=None):
    B, S, D = x.shape
    K = lp['centers'].shape[0]
    Kp = _round_up(K, _LANE)                         # lane-dense splat axis
    if ts is None:
        ts = _pick_tile(S, 256, _SUBLANE)
    assert S % ts == 0
    n_s = S // ts

    # Pad splats; padded columns are exactly zeroed by the mask.
    centers_p = jnp.zeros((Kp, D), jnp.float32).at[:K, :].set(lp['centers'])
    scales_sq_p = jnp.ones((1, Kp), jnp.float32).at[:, :K].set(lp['scales_sq'])
    mask = jnp.zeros((1, Kp), jnp.float32).at[:, :K].set(1.0)
    c_sq = jnp.sum(centers_p * centers_p, axis=-1)[None, :]          # [1, Kp]
    nhis = (-0.5) / scales_sq_p                                      # [1, Kp]

    aff, ss = pl.pallas_call(
        _splat_stats_kernel,
        out_shape=(jax.ShapeDtypeStruct((B, S, Kp), jnp.float32),
                   jax.ShapeDtypeStruct((B, Kp, D), jnp.float32)),
        grid=(B, n_s),
        in_specs=[
            pl.BlockSpec((1, ts, D), lambda b, s: (b, s, 0)),
            _wspec(centers_p), _wspec(c_sq), _wspec(nhis), _wspec(mask),
            _wspec(lp['wv']),
        ],
        out_specs=(pl.BlockSpec((1, ts, Kp), lambda b, s: (b, s, 0)),
                   pl.BlockSpec((1, Kp, D), lambda b, s: (b, 0, 0))),
        compiler_params=pltpu.CompilerParams(
            dimension_semantics=("parallel", "arbitrary"),
            vmem_limit_bytes=_VMEM_LIMIT),
    )(x, centers_p, c_sq, nhis, mask, lp['wv'])

    weights = (lp['wo'], lp['ln1_g'], lp['ln1_b'], lp['w1'], lp['b1'],
               lp['w2'], lp['b2'], lp['ln2_g'], lp['ln2_b'])
    return pl.pallas_call(
        _layer_main_kernel,
        out_shape=jax.ShapeDtypeStruct((B, S, D), jnp.float32),
        grid=(B, n_s),
        in_specs=[
            pl.BlockSpec((1, ts, D), lambda b, s: (b, s, 0)),
            pl.BlockSpec((1, ts, Kp), lambda b, s: (b, s, 0)),
            pl.BlockSpec((1, Kp, D), lambda b, s: (b, 0, 0)),
        ] + [_wspec(w) for w in weights],
        out_specs=pl.BlockSpec((1, ts, D), lambda b, s: (b, s, 0)),
        compiler_params=pltpu.CompilerParams(
            dimension_semantics=("parallel", "parallel"),
            vmem_limit_bytes=_VMEM_LIMIT),
    )(x, aff, ss, *weights)


def final_projection(x, g, b, wout, *, ts=None, tv=None):
    B, S, D = x.shape
    V = wout.shape[0]
    if ts is None:
        ts = _pick_tile(S, 256, _SUBLANE)
    if tv is None:
        tv = _pick_tile(V, 1024, _LANE)
    assert S % ts == 0 and V % tv == 0
    return pl.pallas_call(
        _final_kernel,
        out_shape=jax.ShapeDtypeStruct((B, S, V), jnp.float32),
        grid=(B, S // ts, V // tv),
        in_specs=[pl.BlockSpec((1, ts, D), lambda b, s, v: (b, s, 0)),
                  _wspec(g), _wspec(b),
                  pl.BlockSpec((tv, D), lambda b, s, v: (v, 0))],
        out_specs=pl.BlockSpec((1, ts, tv), lambda b, s, v: (b, s, v)),
        compiler_params=pltpu.CompilerParams(
            dimension_semantics=("parallel", "parallel", "parallel"),
            vmem_limit_bytes=_VMEM_LIMIT),
    )(x, g, b, wout)


# ----------------------------------------------------------------------------
# Deterministic parameter initialization (mirrors module __init__ shapes).
# Matmul weights are stored in bf16 (f32 accumulation in the kernels).
# ----------------------------------------------------------------------------
def init_params(key, vocab_size, model_dim, num_layers, num_splats,
                max_seq_len, ff_dim=None):
    if ff_dim is None:
        ff_dim = 4 * model_dim
    params = {}
    key, k_tok, k_pos = jax.random.split(key, 3)
    params['token_emb'] = 0.02 * jax.random.normal(
        k_tok, (vocab_size, model_dim), jnp.float32)
    params['pos_emb'] = 0.02 * jax.random.normal(
        k_pos, (max_seq_len, model_dim), jnp.float32)

    layers = []
    for _ in range(num_layers):
        key, kc, ks, kv, ko, k1, k2 = jax.random.split(key, 7)
        centers = 0.02 * jax.random.normal(kc, (num_splats, model_dim), jnp.float32)
        # adaptive splat scales: 0.5 + U[0,1)*0.5, then clamp(exp(log s)) in [0.1, 2.0]
        scales = jnp.clip(0.5 + 0.5 * jax.random.uniform(ks, (num_splats,)), 0.1, 2.0)
        scales_sq = (scales ** 2).reshape(1, num_splats).astype(jnp.float32)
        lp = dict(
            centers=centers,
            scales_sq=scales_sq,
            wv=(0.02 * jax.random.normal(kv, (model_dim, model_dim))).astype(jnp.bfloat16),
            wo=(0.02 * jax.random.normal(ko, (model_dim, model_dim))).astype(jnp.bfloat16),
            ln1_g=jnp.ones((1, model_dim), jnp.float32),
            ln1_b=jnp.zeros((1, model_dim), jnp.float32),
            w1=(0.02 * jax.random.normal(k1, (ff_dim, model_dim))).astype(jnp.bfloat16),
            b1=jnp.zeros((1, ff_dim), jnp.float32),
            w2=(0.02 * jax.random.normal(k2, (model_dim, ff_dim))).astype(jnp.bfloat16),
            b2=jnp.zeros((1, model_dim), jnp.float32),
            ln2_g=jnp.ones((1, model_dim), jnp.float32),
            ln2_b=jnp.zeros((1, model_dim), jnp.float32),
        )
        layers.append(lp)
    params['layers'] = layers

    key, kout = jax.random.split(key)
    params['final_g'] = jnp.ones((1, model_dim), jnp.float32)
    params['final_b'] = jnp.zeros((1, model_dim), jnp.float32)
    params['wout'] = (0.02 * jax.random.normal(
        kout, (vocab_size, model_dim))).astype(jnp.bfloat16)
    return params


# ----------------------------------------------------------------------------
# Full model forward (embedding gather is plain-JAX glue; hot path is Pallas).
# ----------------------------------------------------------------------------
def bio_splatflow_gpt_forward(params, input_ids, *, ts=None, tv=None):
    B, S = input_ids.shape
    tok = jnp.take(params['token_emb'], input_ids, axis=0)        # [B, S, D]
    pos = params['pos_emb'][:S][None, :, :]                       # [1, S, D]
    x = (tok + pos).astype(jnp.float32)         # embedding dropout = identity
    for lp in params['layers']:
        x = splat_layer_forward(x, lp, ts=ts)
    return final_projection(x, params['final_g'], params['final_b'],
                            params['wout'], ts=ts, tv=tv)


# ----------------------------------------------------------------------------
# Pure-JAX reference (same math, f32 end-to-end) for a sanity check.
# ----------------------------------------------------------------------------
def _reference_forward(params, input_ids):
    hp = jax.lax.Precision.HIGHEST
    f32 = lambda a: a.astype(jnp.float32)
    tok = jnp.take(params['token_emb'], input_ids, axis=0)
    pos = params['pos_emb'][:input_ids.shape[1]][None, :, :]
    x = tok + pos
    for lp in params['layers']:
        diff = x[:, :, None, :] - lp['centers'][None, None, :, :]
        dist_sq = jnp.sum(diff ** 2, axis=-1)
        aff = jnp.exp(-0.5 * dist_sq / lp['scales_sq'][None])
        aff = aff / (jnp.sum(aff, axis=-1, keepdims=True) + 1e-8)
        tv = jnp.einsum('bsd,ed->bse', x, f32(lp['wv']), precision=hp)
        ss = jnp.einsum('bsk,bsd->bkd', aff, tv, precision=hp)
        to = jnp.einsum('bsk,bkd->bsd', aff, ss, precision=hp)
        attn = jnp.einsum('bsd,ed->bse', to, f32(lp['wo']), precision=hp)
        h = x + attn
        mu = jnp.mean(h, axis=-1, keepdims=True)
        var = jnp.mean((h - mu) ** 2, axis=-1, keepdims=True)
        h = (h - mu) / jnp.sqrt(var + LN_EPS) * lp['ln1_g'] + lp['ln1_b']
        f = jnp.einsum('bsd,fd->bsf', h, f32(lp['w1']), precision=hp) + lp['b1']
        f = 0.5 * f * (1.0 + lax.erf(f * _INV_SQRT2))
        f = jnp.einsum('bsf,df->bsd', f, f32(lp['w2']), precision=hp) + lp['b2']
        h2 = h + f
        mu2 = jnp.mean(h2, axis=-1, keepdims=True)
        var2 = jnp.mean((h2 - mu2) ** 2, axis=-1, keepdims=True)
        x = (h2 - mu2) / jnp.sqrt(var2 + LN_EPS) * lp['ln2_g'] + lp['ln2_b']
    mu = jnp.mean(x, axis=-1, keepdims=True)
    var = jnp.mean((x - mu) ** 2, axis=-1, keepdims=True)
    x = (x - mu) / jnp.sqrt(var + LN_EPS) * params['final_g'] + params['final_b']
    return jnp.einsum('bsd,vd->bsv', x, f32(params['wout']), precision=hp)


if __name__ == "__main__":
    # Small config consistent with the module's constructor; D/V are multiples
    # of 128 (lane-dense), S is tiled (ts=8) to exercise the reduction pass,
    # V is tiled (tv=128) to exercise the vocab-tiled projection.
    VOCAB, D, LAYERS, SPLATS, MAX_SEQ = 256, 128, 2, 16, 64
    B, S = 2, 16

    key = jax.random.PRNGKey(0)
    key, k_params, k_ids = jax.random.split(key, 3)
    params = init_params(k_params, VOCAB, D, LAYERS, SPLATS, MAX_SEQ)
    input_ids = jax.random.randint(k_ids, (B, S), 0, VOCAB, dtype=jnp.int32)

    fwd = jax.jit(functools.partial(bio_splatflow_gpt_forward, ts=8, tv=128))
    logits = jax.block_until_ready(fwd(params, input_ids))

    ref = jax.block_until_ready(_reference_forward(params, input_ids))
    assert logits.shape == (B, S, VOCAB)
    max_err = float(np.max(np.abs(np.asarray(logits) - np.asarray(ref))))
    assert np.allclose(np.asarray(logits), np.asarray(ref),
                       atol=1e-2, rtol=1e-2), max_err

    print("KERNEL_OK")
</pallas_src>

<mosaic_0001>
module attributes {stable_mosaic.version = 11 : i64} {
  func.func @_splat_stats_kernel(%arg0: i32, %arg1: i32, %arg2: memref<1x8x128xf32, #tpu.memory_space<vmem>>, %arg3: memref<128x128xf32, #tpu.memory_space<vmem>>, %arg4: memref<1x128xf32, #tpu.memory_space<vmem>>, %arg5: memref<1x128xf32, #tpu.memory_space<vmem>>, %arg6: memref<1x128xf32, #tpu.memory_space<vmem>>, %arg7: memref<128x128xbf16, #tpu.memory_space<vmem>>, %arg8: memref<1x8x128xf32, #tpu.memory_space<vmem>>, %arg9: memref<1x128x128xf32, #tpu.memory_space<vmem>>) attributes {dimension_semantics = [#tpu.dimension_semantics<parallel>, #tpu.dimension_semantics<arbitrary>], iteration_bounds = array<i64: 2, 2>, scalar_prefetch = 0 : i64, scratch_operands = 0 : i64, tpu.core_type = #tpu.core_type<tc>, window_params = [{transform_indices = @transform_0, window_bounds = array<i64: 1, 8, 128>}, {pipeline_mode = #tpu.pipeline_mode<synchronous>, transform_indices = @transform_1, window_bounds = array<i64: 128, 128>}, {pipeline_mode = #tpu.pipeline_mode<synchronous>, transform_indices = @transform_2, window_bounds = array<i64: 1, 128>}, {pipeline_mode = #tpu.pipeline_mode<synchronous>, transform_indices = @transform_3, window_bounds = array<i64: 1, 128>}, {pipeline_mode = #tpu.pipeline_mode<synchronous>, transform_indices = @transform_4, window_bounds = array<i64: 1, 128>}, {pipeline_mode = #tpu.pipeline_mode<synchronous>, transform_indices = @transform_5, window_bounds = array<i64: 128, 128>}, {transform_indices = @transform_6, window_bounds = array<i64: 1, 8, 128>}, {transform_indices = @transform_7, window_bounds = array<i64: 1, 128, 128>}]} {
    %c0 = arith.constant 0 : index
    %c0_0 = arith.constant 0 : index
    %c0_1 = arith.constant 0 : index
    %0 = vector.load %arg2[%c0, %c0_0, %c0_1] : memref<1x8x128xf32, #tpu.memory_space<vmem>>, vector<1x8x128xf32>
    %1 = vector.shape_cast %0 : vector<1x8x128xf32> to vector<8x128xf32>
    %c0_2 = arith.constant 0 : index
    %c0_3 = arith.constant 0 : index
    %2 = vector.load %arg3[%c0_2, %c0_3] : memref<128x128xf32, #tpu.memory_space<vmem>>, vector<128x128xf32>
    %cst = arith.constant dense<0.000000e+00> : vector<8x128xf32>
    %3 = tpu.matmul %1, %2, %cst {dimension_numbers = #tpu.dot_dimension_numbers<[1], [1], [0], [0], [0, 0, 1, 0], [], []>} : vector<8x128xf32>, vector<128x128xf32>, vector<8x128xf32> -> vector<8x128xf32>
    %4 = arith.mulf %1, %1 : vector<8x128xf32>
    %cst_4 = arith.constant dense<0.000000e+00> : vector<8xf32>
    %5 = vector.multi_reduction <add>, %4, %cst_4 [1] : vector<8x128xf32> to vector<8xf32>
    %6 = vector.shape_cast %5 : vector<8xf32> to vector<8x1xf32>
    %c0_5 = arith.constant 0 : index
    %c0_6 = arith.constant 0 : index
    %7 = vector.load %arg4[%c0_5, %c0_6] : memref<1x128xf32, #tpu.memory_space<vmem>>, vector<1x128xf32>
    %8 = vector.broadcast %6 : vector<8x1xf32> to vector<8x128xf32>
    %9 = vector.broadcast %7 : vector<1x128xf32> to vector<8x128xf32>
    %10 = arith.addf %8, %9 : vector<8x128xf32>
    %cst_7 = arith.constant 2.000000e+00 : f32
    %11 = vector.broadcast %cst_7 : f32 to vector<8x128xf32>
    %12 = arith.mulf %11, %3 : vector<8x128xf32>
    %13 = arith.subf %10, %12 : vector<8x128xf32>
    %cst_8 = arith.constant 0.000000e+00 : f32
    %14 = vector.broadcast %cst_8 : f32 to vector<8x128xf32>
    %15 = arith.maximumf %13, %14 : vector<8x128xf32>
    %c0_9 = arith.constant 0 : index
    %c0_10 = arith.constant 0 : index
    %16 = vector.load %arg5[%c0_9, %c0_10] : memref<1x128xf32, #tpu.memory_space<vmem>>, vector<1x128xf32>
    %17 = vector.broadcast %16 : vector<1x128xf32> to vector<8x128xf32>
    %18 = arith.mulf %15, %17 : vector<8x128xf32>
    %19 = math.exp %18 : vector<8x128xf32>
    %c0_11 = arith.constant 0 : index
    %c0_12 = arith.constant 0 : index
    %20 = vector.load %arg6[%c0_11, %c0_12] : memref<1x128xf32, #tpu.memory_space<vmem>>, vector<1x128xf32>
    %21 = vector.broadcast %20 : vector<1x128xf32> to vector<8x128xf32>
    %22 = arith.mulf %19, %21 : vector<8x128xf32>
    %cst_13 = arith.constant dense<0.000000e+00> : vector<8xf32>
    %23 = vector.multi_reduction <add>, %22, %cst_13 [1] : vector<8x128xf32> to vector<8xf32>
    %24 = vector.shape_cast %23 : vector<8xf32> to vector<8x1xf32>
    %cst_14 = arith.constant 9.99999993E-9 : f32
    %25 = vector.broadcast %cst_14 : f32 to vector<8x1xf32>
    %26 = arith.addf %24, %25 : vector<8x1xf32>
    %27 = tpu.reciprocal %26 {approx = true} : vector<8x1xf32> -> vector<8x1xf32>
    %28 = vector.broadcast %27 : vector<8x1xf32> to vector<8x128xf32>
    %29 = arith.mulf %22, %28 : vector<8x128xf32>
    %c0_15 = arith.constant 0 : index
    %c0_16 = arith.constant 0 : index
    %c0_17 = arith.constant 0 : index
    %30 = vector.load %arg8[%c0_15, %c0_16, %c0_17] : memref<1x8x128xf32, #tpu.memory_space<vmem>>, vector<1x8x128xf32>
    %31 = vector.shape_cast %30 : vector<1x8x128xf32> to vector<8x128xf32>
    %32 = vector.shape_cast %29 : vector<8x128xf32> to vector<1x8x128xf32>
    tpu.vector_store %arg8[%c0_15, %c0_16, %c0_17], %32 {strides = array<i32>} : memref<1x8x128xf32, #tpu.memory_space<vmem>>, vector<1x8x128xf32>,
    %33 = arith.truncf %1 : vector<8x128xf32> to vector<8x128xbf16>
    %c0_18 = arith.constant 0 : index
    %c0_19 = arith.constant 0 : index
    %34 = vector.load %arg7[%c0_18, %c0_19] : memref<128x128xbf16, #tpu.memory_space<vmem>>, vector<128x128xbf16>
    %cst_20 = arith.constant dense<0.000000e+00> : vector<8x128xf32>
    %35 = tpu.matmul %33, %34, %cst_20 {dimension_numbers = #tpu.dot_dimension_numbers<[1], [1], [0], [0], [0, 0, 1, 0], [], []>} : vector<8x128xbf16>, vector<128x128xbf16>, vector<8x128xf32> -> vector<8x128xf32>
    %36 = arith.truncf %29 : vector<8x128xf32> to vector<8x128xbf16>
    %37 = arith.truncf %35 : vector<8x128xf32> to vector<8x128xbf16>
    %cst_21 = arith.constant dense<0.000000e+00> : vector<128x128xf32>
    %38 = tpu.matmul %36, %37, %cst_21 {dimension_numbers = #tpu.dot_dimension_numbers<[0], [0], [1], [1], [0, 1, 1, 1], [], []>} : vector<8x128xbf16>, vector<8x128xbf16>, vector<128x128xf32> -> vector<128x128xf32>
    %c0_i32 = arith.constant 0 : i32
    %39 = arith.cmpi eq, %arg1, %c0_i32 : i32
    %40 = arith.extui %39 : i1 to i32
    %c0_i32_22 = arith.constant 0 : i32
    %41 = arith.cmpi ne, %40, %c0_i32_22 : i32
    scf.if %41 {
      %c0_25 = arith.constant 0 : index
      %c0_26 = arith.constant 0 : index
      %c0_27 = arith.constant 0 : index
      %45 = vector.load %arg9[%c0_25, %c0_26, %c0_27] : memref<1x128x128xf32, #tpu.memory_space<vmem>>, vector<1x128x128xf32>
      %46 = vector.shape_cast %45 : vector<1x128x128xf32> to vector<128x128xf32>
      %47 = vector.shape_cast %38 : vector<128x128xf32> to vector<1x128x128xf32>
      tpu.vector_store %arg9[%c0_25, %c0_26, %c0_27], %47 {strides = array<i32>} : memref<1x128x128xf32, #tpu.memory_space<vmem>>, vector<1x128x128xf32>,
    } else {
    }
    %c0_i32_23 = arith.constant 0 : i32
    %42 = arith.cmpi ne, %arg1, %c0_i32_23 : i32
    %43 = arith.extui %42 : i1 to i32
    %c0_i32_24 = arith.constant 0 : i32
    %44 = arith.cmpi ne, %43, %c0_i32_24 : i32
    scf.if %44 {
      %c0_25 = arith.constant 0 : index
      %c0_26 = arith.constant 0 : index
      %c0_27 = arith.constant 0 : index
      %45 = vector.load %arg9[%c0_25, %c0_26, %c0_27] : memref<1x128x128xf32, #tpu.memory_space<vmem>>, vector<1x128x128xf32>
      %46 = vector.shape_cast %45 : vector<1x128x128xf32> to vector<128x128xf32>
      %47 = arith.addf %46, %38 : vector<128x128xf32>
      %c0_28 = arith.constant 0 : index
      %c0_29 = arith.constant 0 : index
      %c0_30 = arith.constant 0 : index
      %48 = vector.load %arg9[%c0_28, %c0_29, %c0_30] : memref<1x128x128xf32, #tpu.memory_space<vmem>>, vector<1x128x128xf32>
      %49 = vector.shape_cast %48 : vector<1x128x128xf32> to vector<128x128xf32>
      %50 = vector.shape_cast %47 : vector<128x128xf32> to vector<1x128x128xf32>
      tpu.vector_store %arg9[%c0_28, %c0_29, %c0_30], %50 {strides = array<i32>} : memref<1x128x128xf32, #tpu.memory_space<vmem>>, vector<1x128x128xf32>,
    } else {
    }
    return
  }
  func.func @transform_0(%arg0: i32, %arg1: i32) -> (i32, i32, i32) {
    %c0_i32 = arith.constant 0 : i32
    %c0_i32_0 = arith.constant 0 : i32
    return %arg0, %arg1, %c0_i32 : i32, i32, i32
  }
  func.func @transform_1(%arg0: i32, %arg1: i32) -> (i32, i32) {
    %c0_i32 = arith.constant 0 : i32
    %c0_i32_0 = arith.constant 0 : i32
    %c0_i32_1 = arith.constant 0 : i32
    return %c0_i32, %c0_i32_0 : i32, i32
  }
  func.func @transform_2(%arg0: i32, %arg1: i32) -> (i32, i32) {
    %c0_i32 = arith.constant 0 : i32
    %c0_i32_0 = arith.constant 0 : i32
    %c0_i32_1 = arith.constant 0 : i32
    return %c0_i32, %c0_i32_0 : i32, i32
  }
  func.func @transform_3(%arg0: i32, %arg1: i32) -> (i32, i32) {
    %c0_i32 = arith.constant 0 : i32
    %c0_i32_0 = arith.constant 0 : i32
    %c0_i32_1 = arith.constant 0 : i32
    return %c0_i32, %c0_i32_0 : i32, i32
  }
  func.func @transform_4(%arg0: i32, %arg1: i32) -> (i32, i32) {
    %c0_i32 = arith.constant 0 : i32
    %c0_i32_0 = arith.constant 0 : i32
    %c0_i32_1 = arith.constant 0 : i32
    return %c0_i32, %c0_i32_0 : i32, i32
  }
  func.func @transform_5(%arg0: i32, %arg1: i32) -> (i32, i32) {
    %c0_i32 = arith.constant 0 : i32
    %c0_i32_0 = arith.constant 0 : i32
    %c0_i32_1 = arith.constant 0 : i32
    return %c0_i32, %c0_i32_0 : i32, i32
  }
  func.func @transform_6(%arg0: i32, %arg1: i32) -> (i32, i32, i32) {
    %c0_i32 = arith.constant 0 : i32
    %c0_i32_0 = arith.constant 0 : i32
    return %arg0, %arg1, %c0_i32 : i32, i32, i32
  }
  func.func @transform_7(%arg0: i32, %arg1: i32) -> (i32, i32, i32) {
    %c0_i32 = arith.constant 0 : i32
    %c0_i32_0 = arith.constant 0 : i32
    %c0_i32_1 = arith.constant 0 : i32
    return %arg0, %c0_i32, %c0_i32_0 : i32, i32, i32
  }
}

module attributes {stable_mosaic.version = 11 : i64} {
  func.func @_layer_main_kernel(%arg0: i32, %arg1: i32, %arg2: memref<1x8x128xf32, #tpu.memory_space<vmem>>, %arg3: memref<1x8x128xf32, #tpu.memory_space<vmem>>, %arg4: memref<1x128x128xf32, #tpu.memory_space<vmem>>, %arg5: memref<128x128xbf16, #tpu.memory_space<vmem>>, %arg6: memref<1x128xf32, #tpu.memory_space<vmem>>, %arg7: memref<1x128xf32, #tpu.memory_space<vmem>>, %arg8: memref<512x128xbf16, #tpu.memory_space<vmem>>, %arg9: memref<1x512xf32, #tpu.memory_space<vmem>>, %arg10: memref<128x512xbf16, #tpu.memory_space<vmem>>, %arg11: memref<1x128xf32, #tpu.memory_space<vmem>>, %arg12: memref<1x128xf32, #tpu.memory_space<vmem>>, %arg13: memref<1x128xf32, #tpu.memory_space<vmem>>, %arg14: memref<1x8x128xf32, #tpu.memory_space<vmem>>) attributes {dimension_semantics = [#tpu.dimension_semantics<parallel>, #tpu.dimension_semantics<parallel>], iteration_bounds = array<i64: 2, 2>, scalar_prefetch = 0 : i64, scratch_operands = 0 : i64, tpu.core_type = #tpu.core_type<tc>, window_params = [{transform_indices = @transform_0, window_bounds = array<i64: 1, 8, 128>}, {transform_indices = @transform_1, window_bounds = array<i64: 1, 8, 128>}, {transform_indices = @transform_2, window_bounds = array<i64: 1, 128, 128>}, {pipeline_mode = #tpu.pipeline_mode<synchronous>, transform_indices = @transform_3, window_bounds = array<i64: 128, 128>}, {pipeline_mode = #tpu.pipeline_mode<synchronous>, transform_indices = @transform_4, window_bounds = array<i64: 1, 128>}, {pipeline_mode = #tpu.pipeline_mode<synchronous>, transform_indices = @transform_5, window_bounds = array<i64: 1, 128>}, {pipeline_mode = #tpu.pipeline_mode<synchronous>, transform_indices = @transform_6, window_bounds = array<i64: 512, 128>}, {pipeline_mode = #tpu.pipeline_mode<synchronous>, transform_indices = @transform_7, window_bounds = array<i64: 1, 512>}, {pipeline_mode = #tpu.pipeline_mode<synchronous>, transform_indices = @transform_8, window_bounds = array<i64: 128, 512>}, {pipeline_mode = #tpu.pipeline_mode<synchronous>, transform_indices = @transform_9, window_bounds = array<i64: 1, 128>}, {pipeline_mode = #tpu.pipeline_mode<synchronous>, transform_indices = @transform_10, window_bounds = array<i64: 1, 128>}, {pipeline_mode = #tpu.pipeline_mode<synchronous>, transform_indices = @transform_11, window_bounds = array<i64: 1, 128>}, {transform_indices = @transform_12, window_bounds = array<i64: 1, 8, 128>}]} {
    %c0 = arith.constant 0 : index
    %c0_0 = arith.constant 0 : index
    %c0_1 = arith.constant 0 : index
    %0 = vector.load %arg2[%c0, %c0_0, %c0_1] : memref<1x8x128xf32, #tpu.memory_space<vmem>>, vector<1x8x128xf32>
    %1 = vector.shape_cast %0 : vector<1x8x128xf32> to vector<8x128xf32>
    %c0_2 = arith.constant 0 : index
    %c0_3 = arith.constant 0 : index
    %c0_4 = arith.constant 0 : index
    %2 = vector.load %arg3[%c0_2, %c0_3, %c0_4] : memref<1x8x128xf32, #tpu.memory_space<vmem>>, vector<1x8x128xf32>
    %3 = vector.shape_cast %2 : vector<1x8x128xf32> to vector<8x128xf32>
    %c0_5 = arith.constant 0 : index
    %c0_6 = arith.constant 0 : index
    %c0_7 = arith.constant 0 : index
    %4 = vector.load %arg4[%c0_5, %c0_6, %c0_7] : memref<1x128x128xf32, #tpu.memory_space<vmem>>, vector<1x128x128xf32>
    %5 = vector.shape_cast %4 : vector<1x128x128xf32> to vector<128x128xf32>
    %6 = arith.truncf %3 : vector<8x128xf32> to vector<8x128xbf16>
    %7 = arith.truncf %5 : vector<128x128xf32> to vector<128x128xbf16>
    %cst = arith.constant dense<0.000000e+00> : vector<8x128xf32>
    %8 = tpu.matmul %6, %7, %cst {dimension_numbers = #tpu.dot_dimension_numbers<[1], [0], [0], [1], [0, 0, 1, 1], [], []>} : vector<8x128xbf16>, vector<128x128xbf16>, vector<8x128xf32> -> vector<8x128xf32>
    %9 = arith.truncf %8 : vector<8x128xf32> to vector<8x128xbf16>
    %c0_8 = arith.constant 0 : index
    %c0_9 = arith.constant 0 : index
    %10 = vector.load %arg5[%c0_8, %c0_9] : memref<128x128xbf16, #tpu.memory_space<vmem>>, vector<128x128xbf16>
    %cst_10 = arith.constant dense<0.000000e+00> : vector<8x128xf32>
    %11 = tpu.matmul %9, %10, %cst_10 {dimension_numbers = #tpu.dot_dimension_numbers<[1], [1], [0], [0], [0, 0, 1, 0], [], []>} : vector<8x128xbf16>, vector<128x128xbf16>, vector<8x128xf32> -> vector<8x128xf32>
    %12 = arith.addf %1, %11 : vector<8x128xf32>
    %c0_11 = arith.constant 0 : index
    %c0_12 = arith.constant 0 : index
    %13 = vector.load %arg6[%c0_11, %c0_12] : memref<1x128xf32, #tpu.memory_space<vmem>>, vector<1x128xf32>
    %c0_13 = arith.constant 0 : index
    %c0_14 = arith.constant 0 : index
    %14 = vector.load %arg7[%c0_13, %c0_14] : memref<1x128xf32, #tpu.memory_space<vmem>>, vector<1x128xf32>
    %cst_15 = arith.constant dense<0.000000e+00> : vector<8xf32>
    %15 = vector.multi_reduction <add>, %12, %cst_15 [1] : vector<8x128xf32> to vector<8xf32>
    %16 = vector.shape_cast %15 : vector<8xf32> to vector<8x1xf32>
    %cst_16 = arith.constant 7.812500e-03 : f32
    %17 = vector.broadcast %cst_16 : f32 to vector<8x1xf32>
    %18 = arith.mulf %16, %17 : vector<8x1xf32>
    %19 = arith.mulf %12, %12 : vector<8x128xf32>
    %cst_17 = arith.constant dense<0.000000e+00> : vector<8xf32>
    %20 = vector.multi_reduction <add>, %19, %cst_17 [1] : vector<8x128xf32> to vector<8xf32>
    %21 = vector.shape_cast %20 : vector<8xf32> to vector<8x1xf32>
    %cst_18 = arith.constant 7.812500e-03 : f32
    %22 = vector.broadcast %cst_18 : f32 to vector<8x1xf32>
    %23 = arith.mulf %21, %22 : vector<8x1xf32>
    %24 = arith.mulf %18, %18 : vector<8x1xf32>
    %25 = arith.subf %23, %24 : vector<8x1xf32>
    %cst_19 = arith.constant 0.000000e+00 : f32
    %26 = vector.broadcast %cst_19 : f32 to vector<8x1xf32>
    %27 = arith.maximumf %25, %26 : vector<8x1xf32>
    %28 = vector.broadcast %18 : vector<8x1xf32> to vector<8x128xf32>
    %29 = arith.subf %12, %28 : vector<8x128xf32>
    %cst_20 = arith.constant 9.99999974E-6 : f32
    %30 = vector.broadcast %cst_20 : f32 to vector<8x1xf32>
    %31 = arith.addf %27, %30 : vector<8x1xf32>
    %32 = math.rsqrt %31 : vector<8x1xf32>
    %33 = vector.broadcast %32 : vector<8x1xf32> to vector<8x128xf32>
    %34 = arith.mulf %29, %33 : vector<8x128xf32>
    %35 = vector.broadcast %13 : vector<1x128xf32> to vector<8x128xf32>
    %36 = arith.mulf %34, %35 : vector<8x128xf32>
    %37 = vector.broadcast %14 : vector<1x128xf32> to vector<8x128xf32>
    %38 = arith.addf %36, %37 : vector<8x128xf32>
    %39 = arith.truncf %38 : vector<8x128xf32> to vector<8x128xbf16>
    %c0_21 = arith.constant 0 : index
    %c0_22 = arith.constant 0 : index
    %40 = vector.load %arg8[%c0_21, %c0_22] : memref<512x128xbf16, #tpu.memory_space<vmem>>, vector<512x128xbf16>
    %cst_23 = arith.constant dense<0.000000e+00> : vector<8x512xf32>
    %41 = tpu.matmul %39, %40, %cst_23 {dimension_numbers = #tpu.dot_dimension_numbers<[1], [1], [0], [0], [0, 0, 1, 0], [], []>} : vector<8x128xbf16>, vector<512x128xbf16>, vector<8x512xf32> -> vector<8x512xf32>
    %c0_24 = arith.constant 0 : index
    %c0_25 = arith.constant 0 : index
    %42 = vector.load %arg9[%c0_24, %c0_25] : memref<1x512xf32, #tpu.memory_space<vmem>>, vector<1x512xf32>
    %43 = vector.broadcast %42 : vector<1x512xf32> to vector<8x512xf32>
    %44 = arith.addf %41, %43 : vector<8x512xf32>
    %cst_26 = arith.constant 5.000000e-01 : f32
    %45 = vector.broadcast %cst_26 : f32 to vector<8x512xf32>
    %46 = arith.mulf %45, %44 : vector<8x512xf32>
    %cst_27 = arith.constant 0.707106769 : f32
    %47 = vector.broadcast %cst_27 : f32 to vector<8x512xf32>
    %48 = arith.mulf %44, %47 : vector<8x512xf32>
    %49 = math.erf %48 : vector<8x512xf32>
    %cst_28 = arith.constant 1.000000e+00 : f32
    %50 = vector.broadcast %cst_28 : f32 to vector<8x512xf32>
    %51 = arith.addf %50, %49 : vector<8x512xf32>
    %52 = arith.mulf %46, %51 : vector<8x512xf32>
    %53 = arith.truncf %52 : vector<8x512xf32> to vector<8x512xbf16>
    %c0_29 = arith.constant 0 : index
    %c0_30 = arith.constant 0 : index
    %54 = vector.load %arg10[%c0_29, %c0_30] : memref<128x512xbf16, #tpu.memory_space<vmem>>, vector<128x512xbf16>
    %cst_31 = arith.constant dense<0.000000e+00> : vector<8x128xf32>
    %55 = tpu.matmul %53, %54, %cst_31 {dimension_numbers = #tpu.dot_dimension_numbers<[1], [1], [0], [0], [0, 0, 1, 0], [], []>} : vector<8x512xbf16>, vector<128x512xbf16>, vector<8x128xf32> -> vector<8x128xf32>
    %c0_32 = arith.constant 0 : index
    %c0_33 = arith.constant 0 : index
    %56 = vector.load %arg11[%c0_32, %c0_33] : memref<1x128xf32, #tpu.memory_space<vmem>>, vector<1x128xf32>
    %57 = vector.broadcast %56 : vector<1x128xf32> to vector<8x128xf32>
    %58 = arith.addf %55, %57 : vector<8x128xf32>
    %59 = arith.addf %38, %58 : vector<8x128xf32>
    %c0_34 = arith.constant 0 : index
    %c0_35 = arith.constant 0 : index
    %60 = vector.load %arg12[%c0_34, %c0_35] : memref<1x128xf32, #tpu.memory_space<vmem>>, vector<1x128xf32>
    %c0_36 = arith.constant 0 : index
    %c0_37 = arith.constant 0 : index
    %61 = vector.load %arg13[%c0_36, %c0_37] : memref<1x128xf32, #tpu.memory_space<vmem>>, vector<1x128xf32>
    %cst_38 = arith.constant dense<0.000000e+00> : vector<8xf32>
    %62 = vector.multi_reduction <add>, %59, %cst_38 [1] : vector<8x128xf32> to vector<8xf32>
    %63 = vector.shape_cast %62 : vector<8xf32> to vector<8x1xf32>
    %cst_39 = arith.constant 7.812500e-03 : f32
    %64 = vector.broadcast %cst_39 : f32 to vector<8x1xf32>
    %65 = arith.mulf %63, %64 : vector<8x1xf32>
    %66 = arith.mulf %59, %59 : vector<8x128xf32>
    %cst_40 = arith.constant dense<0.000000e+00> : vector<8xf32>
    %67 = vector.multi_reduction <add>, %66, %cst_40 [1] : vector<8x128xf32> to vector<8xf32>
    %68 = vector.shape_cast %67 : vector<8xf32> to vector<8x1xf32>
    %cst_41 = arith.constant 7.812500e-03 : f32
    %69 = vector.broadcast %cst_41 : f32 to vector<8x1xf32>
    %70 = arith.mulf %68, %69 : vector<8x1xf32>
    %71 = arith.mulf %65, %65 : vector<8x1xf32>
    %72 = arith.subf %70, %71 : vector<8x1xf32>
    %cst_42 = arith.constant 0.000000e+00 : f32
    %73 = vector.broadcast %cst_42 : f32 to vector<8x1xf32>
    %74 = arith.maximumf %72, %73 : vector<8x1xf32>
    %75 = vector.broadcast %65 : vector<8x1xf32> to vector<8x128xf32>
    %76 = arith.subf %59, %75 : vector<8x128xf32>
    %cst_43 = arith.constant 9.99999974E-6 : f32
    %77 = vector.broadcast %cst_43 : f32 to vector<8x1xf32>
    %78 = arith.addf %74, %77 : vector<8x1xf32>
    %79 = math.rsqrt %78 : vector<8x1xf32>
    %80 = vector.broadcast %79 : vector<8x1xf32> to vector<8x128xf32>
    %81 = arith.mulf %76, %80 : vector<8x128xf32>
    %82 = vector.broadcast %60 : vector<1x128xf32> to vector<8x128xf32>
    %83 = arith.mulf %81, %82 : vector<8x128xf32>
    %84 = vector.broadcast %61 : vector<1x128xf32> to vector<8x128xf32>
    %85 = arith.addf %83, %84 : vector<8x128xf32>
    %c0_44 = arith.constant 0 : index
    %c0_45 = arith.constant 0 : index
    %c0_46 = arith.constant 0 : index
    %86 = vector.load %arg14[%c0_44, %c0_45, %c0_46] : memref<1x8x128xf32, #tpu.memory_space<vmem>>, vector<1x8x128xf32>
    %87 = vector.shape_cast %86 : vector<1x8x128xf32> to vector<8x128xf32>
    %88 = vector.shape_cast %85 : vector<8x128xf32> to vector<1x8x128xf32>
    tpu.vector_store %arg14[%c0_44, %c0_45, %c0_46], %88 {strides = array<i32>} : memref<1x8x128xf32, #tpu.memory_space<vmem>>, vector<1x8x128xf32>,
    return
  }
  func.func @transform_0(%arg0: i32, %arg1: i32) -> (i32, i32, i32) {
    %c0_i32 = arith.constant 0 : i32
    %c0_i32_0 = arith.constant 0 : i32
    return %arg0, %arg1, %c0_i32 : i32, i32, i32
  }
  func.func @transform_1(%arg0: i32, %arg1: i32) -> (i32, i32, i32) {
    %c0_i32 = arith.constant 0 : i32
    %c0_i32_0 = arith.constant 0 : i32
    return %arg0, %arg1, %c0_i32 : i32, i32, i32
  }
  func.func @transform_2(%arg0: i32, %arg1: i32) -> (i32, i32, i32) {
    %c0_i32 = arith.constant 0 : i32
    %c0_i32_0 = arith.constant 0 : i32
    %c0_i32_1 = arith.constant 0 : i32
    return %arg0, %c0_i32, %c0_i32_0 : i32, i32, i32
  }
  func.func @transform_3(%arg0: i32, %arg1: i32) -> (i32, i32) {
    %c0_i32 = arith.constant 0 : i32
    %c0_i32_0 = arith.constant 0 : i32
    %c0_i32_1 = arith.constant 0 : i32
    return %c0_i32, %c0_i32_0 : i32, i32
  }
  func.func @transform_4(%arg0: i32, %arg1: i32) -> (i32, i32) {
    %c0_i32 = arith.constant 0 : i32
    %c0_i32_0 = arith.constant 0 : i32
    %c0_i32_1 = arith.constant 0 : i32
    return %c0_i32, %c0_i32_0 : i32, i32
  }
  func.func @transform_5(%arg0: i32, %arg1: i32) -> (i32, i32) {
    %c0_i32 = arith.constant 0 : i32
    %c0_i32_0 = arith.constant 0 : i32
    %c0_i32_1 = arith.constant 0 : i32
    return %c0_i32, %c0_i32_0 : i32, i32
  }
  func.func @transform_6(%arg0: i32, %arg1: i32) -> (i32, i32) {
    %c0_i32 = arith.constant 0 : i32
    %c0_i32_0 = arith.constant 0 : i32
    %c0_i32_1 = arith.constant 0 : i32
    return %c0_i32, %c0_i32_0 : i32, i32
  }
  func.func @transform_7(%arg0: i32, %arg1: i32) -> (i32, i32) {
    %c0_i32 = arith.constant 0 : i32
    %c0_i32_0 = arith.constant 0 : i32
    %c0_i32_1 = arith.constant 0 : i32
    return %c0_i32, %c0_i32_0 : i32, i32
  }
  func.func @transform_8(%arg0: i32, %arg1: i32) -> (i32, i32) {
    %c0_i32 = arith.constant 0 : i32
    %c0_i32_0 = arith.constant 0 : i32
    %c0_i32_1 = arith.constant 0 : i32
    return %c0_i32, %c0_i32_0 : i32, i32
  }
  func.func @transform_9(%arg0: i32, %arg1: i32) -> (i32, i32) {
    %c0_i32 = arith.constant 0 : i32
    %c0_i32_0 = arith.constant 0 : i32
    %c0_i32_1 = arith.constant 0 : i32
    return %c0_i32, %c0_i32_0 : i32, i32
  }
  func.func @transform_10(%arg0: i32, %arg1: i32) -> (i32, i32) {
    %c0_i32 = arith.constant 0 : i32
    %c0_i32_0 = arith.constant 0 : i32
    %c0_i32_1 = arith.constant 0 : i32
    return %c0_i32, %c0_i32_0 : i32, i32
  }
  func.func @transform_11(%arg0: i32, %arg1: i32) -> (i32, i32) {
    %c0_i32 = arith.constant 0 : i32
    %c0_i32_0 = arith.constant 0 : i32
    %c0_i32_1 = arith.constant 0 : i32
    return %c0_i32, %c0_i32_0 : i32, i32
  }
  func.func @transform_12(%arg0: i32, %arg1: i32) -> (i32, i32, i32) {
    %c0_i32 = arith.constant 0 : i32
    %c0_i32_0 = arith.constant 0 : i32
    return %arg0, %arg1, %c0_i32 : i32, i32, i32
  }
}

module attributes {stable_mosaic.version = 11 : i64} {
  func.func @_final_kernel(%arg0: i32, %arg1: i32, %arg2: i32, %arg3: memref<1x8x128xf32, #tpu.memory_space<vmem>>, %arg4: memref<1x128xf32, #tpu.memory_space<vmem>>, %arg5: memref<1x128xf32, #tpu.memory_space<vmem>>, %arg6: memref<128x128xbf16, #tpu.memory_space<vmem>>, %arg7: memref<1x8x128xf32, #tpu.memory_space<vmem>>) attributes {dimension_semantics = [#tpu.dimension_semantics<parallel>, #tpu.dimension_semantics<parallel>, #tpu.dimension_semantics<parallel>], iteration_bounds = array<i64: 2, 2, 2>, scalar_prefetch = 0 : i64, scratch_operands = 0 : i64, tpu.core_type = #tpu.core_type<tc>, window_params = [{transform_indices = @transform_0, window_bounds = array<i64: 1, 8, 128>}, {pipeline_mode = #tpu.pipeline_mode<synchronous>, transform_indices = @transform_1, window_bounds = array<i64: 1, 128>}, {pipeline_mode = #tpu.pipeline_mode<synchronous>, transform_indices = @transform_2, window_bounds = array<i64: 1, 128>}, {transform_indices = @transform_3, window_bounds = array<i64: 128, 128>}, {transform_indices = @transform_4, window_bounds = array<i64: 1, 8, 128>}]} {
    %c0 = arith.constant 0 : index
    %c0_0 = arith.constant 0 : index
    %c0_1 = arith.constant 0 : index
    %0 = vector.load %arg3[%c0, %c0_0, %c0_1] : memref<1x8x128xf32, #tpu.memory_space<vmem>>, vector<1x8x128xf32>
    %1 = vector.shape_cast %0 : vector<1x8x128xf32> to vector<8x128xf32>
    %c0_2 = arith.constant 0 : index
    %c0_3 = arith.constant 0 : index
    %2 = vector.load %arg4[%c0_2, %c0_3] : memref<1x128xf32, #tpu.memory_space<vmem>>, vector<1x128xf32>
    %c0_4 = arith.constant 0 : index
    %c0_5 = arith.constant 0 : index
    %3 = vector.load %arg5[%c0_4, %c0_5] : memref<1x128xf32, #tpu.memory_space<vmem>>, vector<1x128xf32>
    %cst = arith.constant dense<0.000000e+00> : vector<8xf32>
    %4 = vector.multi_reduction <add>, %1, %cst [1] : vector<8x128xf32> to vector<8xf32>
    %5 = vector.shape_cast %4 : vector<8xf32> to vector<8x1xf32>
    %cst_6 = arith.constant 7.812500e-03 : f32
    %6 = vector.broadcast %cst_6 : f32 to vector<8x1xf32>
    %7 = arith.mulf %5, %6 : vector<8x1xf32>
    %8 = arith.mulf %1, %1 : vector<8x128xf32>
    %cst_7 = arith.constant dense<0.000000e+00> : vector<8xf32>
    %9 = vector.multi_reduction <add>, %8, %cst_7 [1] : vector<8x128xf32> to vector<8xf32>
    %10 = vector.shape_cast %9 : vector<8xf32> to vector<8x1xf32>
    %cst_8 = arith.constant 7.812500e-03 : f32
    %11 = vector.broadcast %cst_8 : f32 to vector<8x1xf32>
    %12 = arith.mulf %10, %11 : vector<8x1xf32>
    %13 = arith.mulf %7, %7 : vector<8x1xf32>
    %14 = arith.subf %12, %13 : vector<8x1xf32>
    %cst_9 = arith.constant 0.000000e+00 : f32
    %15 = vector.broadcast %cst_9 : f32 to vector<8x1xf32>
    %16 = arith.maximumf %14, %15 : vector<8x1xf32>
    %17 = vector.broadcast %7 : vector<8x1xf32> to vector<8x128xf32>
    %18 = arith.subf %1, %17 : vector<8x128xf32>
    %cst_10 = arith.constant 9.99999974E-6 : f32
    %19 = vector.broadcast %cst_10 : f32 to vector<8x1xf32>
    %20 = arith.addf %16, %19 : vector<8x1xf32>
    %21 = math.rsqrt %20 : vector<8x1xf32>
    %22 = vector.broadcast %21 : vector<8x1xf32> to vector<8x128xf32>
    %23 = arith.mulf %18, %22 : vector<8x128xf32>
    %24 = vector.broadcast %2 : vector<1x128xf32> to vector<8x128xf32>
    %25 = arith.mulf %23, %24 : vector<8x128xf32>
    %26 = vector.broadcast %3 : vector<1x128xf32> to vector<8x128xf32>
    %27 = arith.addf %25, %26 : vector<8x128xf32>
    %28 = arith.truncf %27 : vector<8x128xf32> to vector<8x128xbf16>
    %c0_11 = arith.constant 0 : index
    %c0_12 = arith.constant 0 : index
    %29 = vector.load %arg6[%c0_11, %c0_12] : memref<128x128xbf16, #tpu.memory_space<vmem>>, vector<128x128xbf16>
    %cst_13 = arith.constant dense<0.000000e+00> : vector<8x128xf32>
    %30 = tpu.matmul %28, %29, %cst_13 {dimension_numbers = #tpu.dot_dimension_numbers<[1], [1], [0], [0], [0, 0, 1, 0], [], []>} : vector<8x128xbf16>, vector<128x128xbf16>, vector<8x128xf32> -> vector<8x128xf32>
    %c0_14 = arith.constant 0 : index
    %c0_15 = arith.constant 0 : index
    %c0_16 = arith.constant 0 : index
    %31 = vector.load %arg7[%c0_14, %c0_15, %c0_16] : memref<1x8x128xf32, #tpu.memory_space<vmem>>, vector<1x8x128xf32>
    %32 = vector.shape_cast %31 : vector<1x8x128xf32> to vector<8x128xf32>
    %33 = vector.shape_cast %30 : vector<8x128xf32> to vector<1x8x128xf32>
    tpu.vector_store %arg7[%c0_14, %c0_15, %c0_16], %33 {strides = array<i32>} : memref<1x8x128xf32, #tpu.memory_space<vmem>>, vector<1x8x128xf32>,
    return
  }
  func.func @transform_0(%arg0: i32, %arg1: i32, %arg2: i32) -> (i32, i32, i32) {
    %c0_i32 = arith.constant 0 : i32
    %c0_i32_0 = arith.constant 0 : i32
    return %arg0, %arg1, %c0_i32 : i32, i32, i32
  }
  func.func @transform_1(%arg0: i32, %arg1: i32, %arg2: i32) -> (i32, i32) {
    %c0_i32 = arith.constant 0 : i32
    %c0_i32_0 = arith.constant 0 : i32
    %c0_i32_1 = arith.constant 0 : i32
    return %c0_i32, %c0_i32_0 : i32, i32
  }
  func.func @transform_2(%arg0: i32, %arg1: i32, %arg2: i32) -> (i32, i32) {
    %c0_i32 = arith.constant 0 : i32
    %c0_i32_0 = arith.constant 0 : i32
    %c0_i32_1 = arith.constant 0 : i32
    return %c0_i32, %c0_i32_0 : i32, i32
  }
  func.func @transform_3(%arg0: i32, %arg1: i32, %arg2: i32) -> (i32, i32) {
    %c0_i32 = arith.constant 0 : i32
    %c0_i32_0 = arith.constant 0 : i32
    return %arg2, %c0_i32 : i32, i32
  }
  func.func @transform_4(%arg0: i32, %arg1: i32, %arg2: i32) -> (i32, i32, i32) {
    %c0_i32 = arith.constant 0 : i32
    return %arg0, %arg1, %arg2 : i32, i32, i32
  }
}

</mosaic_0001>

<bundles_post_ra>
// kernel: bio_splatflow_gpt_forward.9
= control target key start
LH: loop header
LB: loop body
LE: loop exit
PB: predicated region body
PF: predicated region fallthrough
CT: control target
= control target key end

     0   :  { %9 = vsyncpa [#allocation3], 0  ;;  %s970_s0 = inlined_call_operand.vmem [shape: f32[2,16,128], index: 0, kind: input, shape index: {}]   ;;  %s971_s1 = inlined_call_operand.vmem [shape: f32[1,128], index: 1, kind: input, shape index: {}]   ;;  %s972_s2 = inlined_call_operand.vmem [shape: f32[1,128], index: 2, kind: input, shape index: {}]   ;;  %s973_s3 = inlined_call_operand.vmem [shape: bf16[256,128], index: 3, kind: input, shape index: {}]   ;;  %s974_s4 = inlined_call_operand.hbm [shape: f32[2,16,256], index: 4, kind: output, shape index: {}]  }
   0x1   :  { %11 = vsyncpa [#allocation3 + $0x1], 0  ;;  %s800_s15 = smov 0   ;;  %s802_s16 = smov 0  }
   0x2   :  { %s804_s17 = smov 0   ;;  %s806_s18 = smov 0  }
   0x3   :  { %s808_s19 = smov 0   ;;  %s810_s20 = smov 0  }
   0x4   :  { %s812_s21 = smov 0   ;;  %s814_s22 = smov 0  }
   0x5   :  { %s816_s23 = smov 0   ;;  %s818_s24 = smov 0  }
   0x6 LB: > { %s506_s25 = sadd.s32 4294967295, %s770_s24   ;;  %s29_s26 = sadd.s32 1, %s758_s21  ;;  %s770_s24 = sphi %s818_s24, %s17_s24   ;;  %s766_s23 = sphi %s816_s23, %s994_s23   ;;  %s762_s22 = sphi %s814_s22, %s993_s22   ;;  %s758_s21 = sphi %s812_s21, %s992_s21   ;;  %s754_s20 = sphi %s810_s20, %s991_s20   ;;  %s750_s19 = sphi %s808_s19, %s990_s19   ;;  %s746_s18 = sphi %s806_s18, %s989_s18   ;;  %s742_s17 = sphi %s804_s17, %s988_s17   ;;  %s738_s16 = sphi %s802_s16, %s987_s16   ;;  %s734_s15 = sphi %s800_s15, %s986_s15  }
   0x7   : > { %p30_p0 = scmp.ge.s32.totalorder %s29_s26, 2  ;;  %s32_s27 = sadd.s32 1, %s762_s22 }
   0x8   : > { %s507_s28 = sadd.s32 4294967294, %s770_s24   ;;  %p153_p1 = scmp.ne.s32.totalorder %s742_s17, %s738_s16 }
   0x9   : > { %s996_s26 = smov (%p30_p0, %s29_s26), 0  ;;  %s998_s27 = smov (!%p30_p0, %s32_s27), %s762_s22 }
   0xa   : > { %978 = sst [smem:[#allocation5_spill]] %s996_s26  ;;  %s36_s29 = sadd.s32 1, %s766_s23 }
   0xb   : > { %p154_p2 = scmp.eq.s32.totalorder %s506_s25, 7  ;;  %p34_p3 = scmp.ge.s32.totalorder %s998_s27, 2 }
   0xc   : > { %p159_p4 = scmp.ne.s32.totalorder %s738_s16, %s734_s15  ;;  %p160_p6 = scmp.eq.s32.totalorder %s507_s28, 7 }
   0xd   : > { %p862_p5 = por %p154_p2, %p153_p1  ;;  %s1000_s27 = smov (%p34_p3, %s998_s27), 0 }
   0xe   : > { %980 = sst [smem:[#allocation6_spill]] %s1000_s27  ;;  %s1002_s29 = smov (!%p34_p3, %s36_s29), %s766_s23 }
   0xf   : > { %p869_p7 = por %p160_p6, %p159_p4  ;;  %p38_p8 = scmp.ge.s32.totalorder %s1002_s29, 2 }
  0x10   : > { %p510_p9 = scmp.ge.s32.totalorder %s770_s24, 1  ;;  %s137_s6 = ssub.s32 %s762_s22, %s1000_s27 }
  0x11   : > { %p204_p10 = scmp.lt.s32.totalorder %s770_s24, 9  ;;  %s1004_s29 = smov (%p38_p8, %s1002_s29), 0 }
  0x12   : > { %982 = sst [smem:[#allocation7_spill]] %s1004_s29  ;;  %s139_s7 = ssub.s32 %s758_s21, %s996_s26 }
  0x13   : > { %p205_p11 = pnand %p510_p9, %p204_p10  ;;  %s136_s8 = ssub.s32 %s766_s23, %s1004_s29 }
  0x14   : > { %s138_s9 = sor.u32 %s137_s6, %s136_s8  ;;  %s143_s11 = sadd.s32 1, %s742_s17  ;;  %v772_v0 = vmov (!%p205_p11), 0.0   ;;  %vm773_vm0 = vmmov (!%p205_p11), 0   ;;  %v516_v21 = vld [vmem:[%s971_s1] ss:$0 sm:$0xff] (!%p205_p11) }
  0x15   : > { %s140_s10 = sor.u32 %s139_s7, %s138_s9  ;;  %208 = sbr.rel (%p205_p11) target bundleno = 435 (0x1b3), region = 36  ;;  %541 = vmatprep.subr.bf16.mxu0 (!%p205_p11), %v772_v0  ;;  %557 = vmatprep.mubr.msk.bf16.mxu0 (!%p205_p11), %vm773_vm0, %v772_v0  ;;  %v517_v23 = vld [vmem:[%s972_s2] ss:$0 sm:$0xff] (!%p205_p11) }
  0x16   : > { %p141_p12 = scmp.eq.s32.totalorder %s140_s10, 0  ;;  %p238_p13 = scmp.lt.s32.totalorder (!%p205_p11), %s754_s20, 1 }
  0x17   : > { %p240_p0 = scmp.lt.s32.totalorder (!%p205_p11), %s750_s19, 1  ;;  %s514_s13 = sshll.u32 (!%p205_p11), %s746_s18, 4 }
  0x18   : > { %s885_s12 = scalar_select %p141_p12, %s742_s17, %s143_s11  }
  0x19   : > { %p247_p1 = scmp.lt.s32.totalorder (!%p205_p11), %s514_s13, 31 }
  0x1c   : > { %s239_s14 = scalar_select %p238_p13, %s754_s20, 1 }
  0x1d   : > { %s241_s25 = scalar_select %p240_p0, %s750_s19, 1 }
  0x1e   : > { %s512_s28 = sshll.u32 %s239_s14, 1  ;;  %s1006_s13 = smov (!%p247_p1, %s514_s13), 31 }
  0x1f   : > { %s243_s6 = sadd.s32 %s512_s28, %s241_s25  ;;  %s515_s11 = sshll.u32 %s1006_s13, 2 }
  0x20   : > { %s513_s7 = sshll.u32 %s243_s6, 3  ;;  %s250_s26 = scalar_lea.vmem %s973_s3, %s515_s11 }
  0x21   : > { %s245_s10 = scalar_lea.vmem %s970_s0, %s513_s7  ;;  %v650_v3 = vld [vmem:[%s250_s26] sm:$0xff]   ;;  %v651_v4 = vld [vmem:[%s250_s26 + $0x8] sm:$0xff]   ;;  %v652_v5 = vld [vmem:[%s250_s26 + $0x10] sm:$0xff]   ;;  %s235_s14 = sand.u32 1, %s738_s16  }
  0x22   : > { %v253_v1 = vld [vmem:[%s245_s10] sm:$0xff]  ;;  %542 = vmatpush3.bf16.xpose.msra.mxu0 %v650_v3  ;;  %v653_v6 = vld [vmem:[%s250_s26 + $0x18] sm:$0xff]   ;;  %v655_v8 = vld [vmem:[%s250_s26 + $0x28] sm:$0xff]   ;;  %s527_s25 = sshll.u32 %s750_s19, 1  ;;  %s511_s28 = sshll.u32 %s235_s14, 3 }
  0x23   : > { %256 = vadd.xlane.f32.xlu0 %v253_v1  ;;  %v259_v2 = vmul.f32 %v253_v1, %v253_v1  ;;  %543 = vmatprep.subr.bf16.mxu0 %v772_v0  ;;  %v654_v7 = vld [vmem:[%s250_s26 + $0x20] sm:$0xff]   ;;  %v656_v9 = vld [vmem:[%s250_s26 + $0x30] sm:$0xff]   ;;  %v657_v10 = vld [vmem:[%s250_s26 + $0x38] sm:$0xff]   ;;  %s402_s6 = sadd.s32 %s746_s18, %s527_s25  ;;  %s528_s7 = sshll.u32 %s754_s20, 2 }
  0x24   : > { %s404_s8 = sadd.s32 %s528_s7, %s402_s6  ;;  %s237_s9 = scalar_lea.vmem [#allocation2], %s511_s28 }
  0x25   : > { %s408_s10 = sshll.u32 %s237_s9, 4  ;;  %s529_s11 = sshll.u32 %s404_s8, 7  ;;  %s908_s10 = int_to_ptr.vmem [resolvable:$true] %s408_s10 }
  0x26   : > { %s913_s26 = scalar_lea.hbm %s974_s4, %s529_s11  ;;  %s391_s18 = scalar_lea.sflag [#allocation3], %s235_s14 }
  0x27   : > { %260 = vadd.xlane.f32.xlu0 %v259_v2  ;;  %s660_s19 = scalar_lea.vmem %s908_s10, 128  ;;  %s774_s20 = smov [#allocation2]  }
  0x28   : > { %p661_p2 = scmp.ne.s32.totalorder %s908_s10, %s660_s19  ;;  %s664_s13 = sshll.u32 %s774_s20, 4  ;;  %s665_s13 = int_to_ptr.vmem [resolvable:$false] %s664_s13 }
  0x29   : > { %s666_s25 = scalar_lea.vmem %s665_s13, 256  ;;  %p667_p6 = scmp.lt.s32.totalorder %s908_s10, %s665_s13 }
  0x2a   : > { %544 = vmatpush3.bf16.xpose.msra.mxu0 %v651_v4  ;;  %p662_p3 = pnand %p661_p2, %p862_p5  ;;  %p668_p8 = scmp.lt.s32.totalorder %s666_s25, %s660_s19 }
  0x2b   : > { %545 = vmatprep.subr.bf16.mxu0 %v772_v0 }
  0x2c   : > { %p663_p4 = pneg %p662_p3  ;;  %p669_p9 = por %p668_p8, %p667_p6 }
  0x2e   : > { %p670_p10 = pnand %p669_p9, %p663_p4 }
  0x32   : > { %546 = vmatpush3.bf16.xpose.msra.mxu0 %v652_v5 }
  0x33   : > { %547 = vmatprep.subr.bf16.mxu0 %v772_v0 }
  0x3a   : > { %548 = vmatpush3.bf16.xpose.msra.mxu0 %v653_v6 }
  0x3b   : > { %549 = vmatprep.subr.bf16.mxu0 %v772_v0 }
  0x42   : > { %550 = vmatpush3.bf16.xpose.msra.mxu0 %v654_v7 }
  0x43   : > { %551 = vmatprep.subr.bf16.mxu0 %v772_v0 }
  0x4a   : > { %552 = vmatpush3.bf16.xpose.msra.mxu0 %v655_v8 }
  0x4b   : > { %553 = vmatprep.subr.bf16.mxu0 %v772_v0 }
  0x52   : > { %554 = vmatpush3.bf16.xpose.msra.mxu0 %v656_v9 }
  0x53   : > { %555 = vmatprep.subr.bf16.mxu0 %v772_v0 }
  0x5a   : > { %556 = vmatpush3.bf16.xpose.msra.mxu0 %v657_v10 }
  0xb0   : > { %v257_v11 = vpop.xlane.xlu0 %256 }
  0xb1   : > { %v258_v12 = vmul.f32 0.0078125, %v257_v11 }
  0xb3   : > { %v263_v14 = vmul.f32 %v258_v12, %v258_v12  ;;  %v266_v19 = vsub.f32 %v253_v1, %v258_v12 }
  0xb4   : > { %v261_v13 = vpop.xlane.xlu0 %260 }
  0xb5   : > { %v262_v15 = vmul.f32 0.0078125, %v261_v13 }
  0xb7   : > { %v264_v16 = vsub.f32 %v262_v15, %v263_v14 }
  0xb9   : > { %v265_v17 = vmax.f32 %v264_v16, 0.0 }
  0xbb   : > { %v267_v18 = vadd.f32 1e-05, %v265_v17 }
  0xbd   : > { %658 = vrsqrt.f32 %v267_v18 }
  0xc7   : > { %v659_v20 = vpop.eup %658 }
  0xc8   : > { %v269_v22 = vmul.f32 %v659_v20, %v266_v19 }
  0xca   : > { %v276_v24 = vmul.f32 %v516_v21, %v269_v22 }
  0xcc   : > { %v283_v25 = vadd.f32 %v517_v23, %v276_v24 }
  0xce   : > { %v284_v26 = vpack.c.bf16 %v283_v25, %v283_v25 }
  0xd0   : > { %558 = vmatmul.mubr.bf16.vlgmr.msra.gmra.mrb[0].mxu0 %v284_v26 }
 0x1a3   : > { %v383_v27 = vpop.f32.mrb[0].mxu0 }
 0x1a4   : > { %389 = vst [vmem:[%s237_s9] sm:$0xff] %v383_v27  ;;  %v559_v28 = vpop.f32.mrb[1].mxu0 }
 0x1a5   : > { %v386_v29 = vpop.f32.mrb[2].mxu0 }
 0x1a6   : > { %673 = shalt.err (!%p670_p10)
}
 0x1a7   : > { %s674_s14 = scalar_lea.hbm %s913_s26, 128  ;;  %s678_s7 = scalar_lea.hbm %s974_s4, 1024 }
 0x1a8   : > { %p675_p11 = scmp.ne.s32.totalorder %s913_s26, %s674_s14  ;;  %p679_p0 = scmp.lt.u32.totalorder %s913_s26, %s974_s4 }
 0x1a9   : > { %p680_p1 = scmp.lt.u32.totalorder %s678_s7, %s674_s14  ;;  %p682_p3 = scmp.lt.u32.totalorder %s674_s14, %s913_s26 }
 0x1aa   : > { %p676_p12 = pnand %p675_p11, %p862_p5 }
 0x1ab   : > { %p681_p2 = por %p680_p1, %p679_p0 }
 0x1ac   : > { %p677_p13 = pneg %p676_p12 }
 0x1ad   : > { %p683_p4 = por %p682_p3, %p681_p2 }
 0x1af   : > { %p684_p6 = pnand %p683_p4, %p677_p13 }
 0x1b1   : > { %687 = shalt.err (!%p684_p6)
}
 0x1b2   : > { %561 = dma.vmem_to_hbm [thread:$0]  (%p862_p5), %s908_s10, 128, %s913_s26, %s391_s18   ;;  %v560_v30 = vpop.f32.mrb[3].mxu0 }
 0x1b3 PF: > { %p567_p8 = scmp.ge.s32.totalorder %s770_s24, 2  ;;  %s420_s11 = sand.u32 1, %s734_s15  }
 0x1b4   : > { %s421_s27 = scalar_lea.sflag [#allocation3], %s420_s11 }
 0x1b5   : > { %p564_p9 = pnand %p567_p8, %p869_p7 }
 0x1b7   : > { %729 = dma.done.wait (!%p564_p9), %s421_s27, 128  }
 0x1b8   : > { %731 = vsyncadd (!%p564_p9), %s421_s27, 4294967168  ;;  %s17_s24 = sadd.s32 1, %s770_s24   ;;  %s983_s30 = sld [smem:[#allocation5_spill]] }
 0x1b9   : > { %p14_p10 = scmp.ge.s32.totalorder %s17_s24, 10   ;;  %s984_s10 = sld [smem:[#allocation6_spill]] }
 0x1ba   : > { %s985_s29 = sld [smem:[#allocation7_spill]]  ;;  %s986_s15 = smov %s738_s16 }
 0x1bb   : > { %s987_s16 = smov %s742_s17  ;;  %s988_s17 = smov %s885_s12 }
 0x1bc   : > { %s989_s18 = smov %s758_s21  ;;  %s990_s19 = smov %s762_s22 }
 0x1bd   : > { %s991_s20 = smov %s766_s23  ;;  %16 = sbr.rel (!%p14_p10) target bundleno = 6 (0x6), region = 74 }
 0x1be   : > { %s992_s21 = smov %s983_s30 }
 0x1bf   : > { %s993_s22 = smov %s984_s10 }
 0x1c0   : > { %s994_s23 = smov %s985_s29 }
 0x1c4   :  { %426 = vsyncpa [#allocation3], 1 }
 0x1c5   :  { %428 = vsyncpa [#allocation3 + $0x1], 1 }

// kernel: bio_splatflow_gpt_forward.5
= control target key start
LH: loop header
LB: loop body
LE: loop exit
PB: predicated region body
PF: predicated region fallthrough
CT: control target
= control target key end

     0   :  { %s1199_s24 = smov 0   ;;  %s1201_s25 = smov 0   ;;  %s1423_s0 = inlined_call_operand.vmem [shape: f32[2,16,128], index: 0, kind: input, shape index: {}]   ;;  %s1424_s1 = inlined_call_operand.vmem [shape: f32[128,128], index: 1, kind: input, shape index: {}]   ;;  %s1425_s2 = inlined_call_operand.vmem [shape: f32[1,128], index: 2, kind: input, shape index: {}]   ;;  %s1426_s3 = inlined_call_operand.vmem [shape: f32[1,128], index: 3, kind: input, shape index: {}]   ;;  %s1427_s4 = inlined_call_operand.vmem [shape: f32[1,128], index: 4, kind: input, shape index: {}]   ;;  %s1428_s5 = inlined_call_operand.vmem [shape: bf16[128,128], index: 5, kind: input, shape index: {}]   ;;  %s1429_s6 = inlined_call_operand.vmem [shape: f32[2,16,128], index: 6, kind: output, shape index: {0}]   ;;  %s1430_s7 = inlined_call_operand.vmem [shape: f32[2,128,128], index: 7, kind: output, shape index: {1}]  }
   0x1   :  { %s1203_s26 = smov 0   ;;  %s1205_s27 = smov 0  }
   0x2   :  { %s1207_s28 = smov 0  }
   0x3 LB: > { %s27_s29 = sadd.s32 1, %s1146_s26  ;;  %s30_s30 = sadd.s32 1, %s1150_s27  ;;  %s1154_s28 = sphi %s1207_s28, %s18_s28   ;;  %s1150_s27 = sphi %s1205_s27, %s1434_s27   ;;  %s1146_s26 = sphi %s1203_s26, %s1433_s26   ;;  %s1142_s25 = sphi %s1201_s25, %s1432_s25   ;;  %s1138_s24 = sphi %s1199_s24, %s1431_s24  }
   0x4   : > { %p28_p0 = scmp.ge.s32.totalorder %s27_s29, 2  ;;  %p893_p1 = scmp.ge.s32.totalorder %s1154_s28, 1 }
   0x5   : > { %p259_p2 = scmp.lt.s32.totalorder %s1154_s28, 5 }
   0x6   : > { %s1436_s29 = smov (%p28_p0, %s27_s29), 0  ;;  %s1438_s30 = smov (!%p28_p0, %s30_s30), %s1150_s27 }
   0x7   : > { %p260_p3 = pnand %p893_p1, %p259_p2  ;;  %p32_p4 = scmp.ge.s32.totalorder %s1438_s30, 2 }
   0x8   : > { %v325_v0 = vld [vmem:[%s1424_s1] sm:$0xff] (!%p260_p3)  ;;  %v326_v1 = vld [vmem:[%s1424_s1 + $0x8] sm:$0xff] (!%p260_p3)  ;;  %v1156_v2 = vmov (!%p260_p3), 0.0|0.0   ;;  %vm1157_vm0 = vmmov (!%p260_p3), 0   ;;  %v1158_v4 = vmov (!%p260_p3), 0.0   ;;  %p302_p5 = scmp.lt.s32.totalorder (!%p260_p3), %s1142_s25, 1 }
   0x9   : > { %s1440_s30 = smov (%p32_p4, %s1438_s30), 0  ;;  %263 = sbr.rel (%p260_p3) target bundleno = 828 (0x33c), region = 44 }
   0xa   : > { %1032 = vmatprep.subr.bf16.mxu0 (!%p260_p3), %v1156_v2  ;;  %v1033_v3 = vpack.c.bf16 (!%p260_p3), %v326_v1, %v325_v0  ;;  %991 = vmatprep.mubr.msk.f32.mxu0 (!%p260_p3), %vm1157_vm0, %v1158_v4  ;;  %p304_p6 = scmp.lt.s32.totalorder (!%p260_p3), %s1138_s24, 1  ;;  %v327_v5 = vld [vmem:[%s1424_s1 + $0x10] sm:$0xff] (!%p260_p3)  ;;  %v328_v6 = vld [vmem:[%s1424_s1 + $0x18] sm:$0xff] (!%p260_p3)  ;;  %v329_v10 = vld [vmem:[%s1424_s1 + $0x20] sm:$0xff] (!%p260_p3)  ;;  %vm597_vm1 = vcmask (!%p260_p3), 1043456   ;;  %vm572_vm2 = vcmask (!%p260_p3), 64512  }
   0xb   : > { %994 = vmatprep.subr.bf16.mxu1 (!%p260_p3), %v1158_v4  ;;  %1010 = vmatprep.mubr.msk.bf16.mxu1 (!%p260_p3), %vm1157_vm0, %v1158_v4  ;;  %v1036_v7 = vpack.c.bf16 (!%p260_p3), %v328_v6, %v327_v5  ;;  %v330_v11 = vld [vmem:[%s1424_s1 + $0x28] sm:$0xff] (!%p260_p3)  ;;  %v331_v13 = vld [vmem:[%s1424_s1 + $0x30] sm:$0xff] (!%p260_p3)  ;;  %v332_v14 = vld [vmem:[%s1424_s1 + $0x38] sm:$0xff] (!%p260_p3)  ;;  %p919_p7 = scmp.ne.s32.totalorder (!%p260_p3), %s1138_s24, 0 }
   0xc   : > { %1034 = vmatpush3.bf16.xpose.msra.mxu0 (!%p260_p3), %v1033_v3  ;;  %v1039_v12 = vpack.c.bf16 (!%p260_p3), %v330_v11, %v329_v10  ;;  %v1042_v15 = vpack.c.bf16 (!%p260_p3), %v332_v14, %v331_v13  ;;  %v333_v16 = vld [vmem:[%s1424_s1 + $0x40] sm:$0xff] (!%p260_p3)  ;;  %v334_v17 = vld [vmem:[%s1424_s1 + $0x48] sm:$0xff] (!%p260_p3)  ;;  %v335_v19 = vld [vmem:[%s1424_s1 + $0x50] sm:$0xff] (!%p260_p3) }
   0xd   : > { %1035 = vmatprep.subr.bf16.mxu0 (!%p260_p3), %v1156_v2  ;;  %v1045_v18 = vpack.c.bf16 (!%p260_p3), %v334_v17, %v333_v16  ;;  %v336_v20 = vld [vmem:[%s1424_s1 + $0x58] sm:$0xff] (!%p260_p3)  ;;  %v337_v22 = vld [vmem:[%s1424_s1 + $0x60] sm:$0xff] (!%p260_p3)  ;;  %v338_v23 = vld [vmem:[%s1424_s1 + $0x68] sm:$0xff] (!%p260_p3) }
   0xe   : > { %v1048_v21 = vpack.c.bf16 (!%p260_p3), %v336_v20, %v335_v19  ;;  %v1051_v24 = vpack.c.bf16 (!%p260_p3), %v338_v23, %v337_v22  ;;  %v339_v25 = vld [vmem:[%s1424_s1 + $0x70] sm:$0xff] (!%p260_p3)  ;;  %v340_v26 = vld [vmem:[%s1424_s1 + $0x78] sm:$0xff] (!%p260_p3)  ;;  %v1104_v28 = vld [vmem:[%s1428_s5] sm:$0xff] (!%p260_p3)  }
   0xf   : > { %v1054_v27 = vpack.c.bf16 (!%p260_p3), %v340_v26, %v339_v25  ;;  %995 = vmatpush3.bf16.xpose.msra.mxu1 (!%p260_p3), %v1104_v28  ;;  %v1105_v29 = vld [vmem:[%s1428_s5 + $0x8] sm:$0xff] (!%p260_p3)   ;;  %v1106_v30 = vld [vmem:[%s1428_s5 + $0x10] sm:$0xff] (!%p260_p3)   ;;  %v1107_v31 = vld [vmem:[%s1428_s5 + $0x18] sm:$0xff] (!%p260_p3)  }
  0x10   : > { %s1442_s25 = smov (!%p302_p5, %s1142_s25), 1  ;;  %996 = vmatprep.subr.bf16.mxu1 %v1158_v4  ;;  %v1108_v32 = vld [vmem:[%s1428_s5 + $0x20] sm:$0xff]   ;;  %v1109_v33 = vld [vmem:[%s1428_s5 + $0x28] sm:$0xff]   ;;  %v1110_v34 = vld [vmem:[%s1428_s5 + $0x30] sm:$0xff]  }
  0x11   : > { %s305_s16 = scalar_select %p304_p6, %s1138_s24, 1  ;;  %v1111_v35 = vld [vmem:[%s1428_s5 + $0x38] sm:$0xff]   ;;  %v900_v37 = vld [vmem:[%s1425_s2] ss:$0 sm:$0xff] }
  0x12   : > { %s894_s17 = sshll.u32 %s1442_s25, 1  ;;  %s923_s18 = sshll.u32 %s1442_s25, 7  ;;  %v901_v44 = vld [vmem:[%s1426_s3] ss:$0 sm:$0xff] }
  0x13   : > { %s1248_s19 = sadd.s32 %s894_s17, %s305_s16  ;;  %s1253_s22 = scalar_lea.vmem %s1430_s7, %s923_s18  ;;  %v902_v48 = vld [vmem:[%s1427_s4] ss:$0 sm:$0xff] }
  0x14   : > { %s895_s23 = sshll.u32 %s1248_s19, 3  ;;  %1037 = vmatpush3.bf16.xpose.msra.mxu0 %v1036_v7 }
  0x15   : > { %s309_s10 = scalar_lea.vmem %s1423_s0, %s895_s23  ;;  %1038 = vmatprep.subr.bf16.mxu0 %v1156_v2  ;;  %s317_s16 = scalar_lea.vmem %s1429_s6, %s895_s23 }
  0x16   : > { %v324_v8 = vld [vmem:[%s309_s10] sm:$0xff] }
  0x17   : > { %v411_v9 = vmul.f32 %v324_v8, %v324_v8  ;;  %997 = vmatpush3.bf16.xpose.msra.mxu1 %v1105_v29  ;;  %v449_v36 = vpack.c.bf16 %v324_v8, %v324_v8 }
  0x18   : > { %998 = vmatprep.subr.bf16.mxu1 %v1158_v4 }
  0x19   : > { %412 = vadd.xlane.f32.xlu0 %v411_v9 }
  0x1c   : > { %1040 = vmatpush3.bf16.xpose.msra.mxu0 %v1039_v12 }
  0x1d   : > { %1041 = vmatprep.subr.bf16.mxu0 %v1156_v2 }
  0x1f   : > { %999 = vmatpush3.bf16.xpose.msra.mxu1 %v1106_v30 }
  0x20   : > { %1000 = vmatprep.subr.bf16.mxu1 %v1158_v4 }
  0x24   : > { %1043 = vmatpush3.bf16.xpose.msra.mxu0 %v1042_v15 }
  0x25   : > { %1044 = vmatprep.subr.bf16.mxu0 %v1156_v2 }
  0x27   : > { %1001 = vmatpush3.bf16.xpose.msra.mxu1 %v1107_v31 }
  0x28   : > { %1002 = vmatprep.subr.bf16.mxu1 %v1158_v4 }
  0x2c   : > { %1046 = vmatpush3.bf16.xpose.msra.mxu0 %v1045_v18 }
  0x2d   : > { %1047 = vmatprep.subr.bf16.mxu0 %v1156_v2 }
  0x2f   : > { %1003 = vmatpush3.bf16.xpose.msra.mxu1 %v1108_v32 }
  0x30   : > { %1004 = vmatprep.subr.bf16.mxu1 %v1158_v4 }
  0x34   : > { %1049 = vmatpush3.bf16.xpose.msra.mxu0 %v1048_v21 }
  0x35   : > { %1050 = vmatprep.subr.bf16.mxu0 %v1156_v2 }
  0x37   : > { %1005 = vmatpush3.bf16.xpose.msra.mxu1 %v1109_v33 }
  0x38   : > { %1006 = vmatprep.subr.bf16.mxu1 %v1158_v4 }
  0x3c   : > { %1052 = vmatpush3.bf16.xpose.msra.mxu0 %v1051_v24 }
  0x3d   : > { %1053 = vmatprep.subr.bf16.mxu0 %v1156_v2 }
  0x3f   : > { %1007 = vmatpush3.bf16.xpose.msra.mxu1 %v1110_v34 }
  0x40   : > { %1008 = vmatprep.subr.bf16.mxu1 %v1158_v4 }
  0x44   : > { %1055 = vmatpush3.bf16.xpose.msra.mxu0 %v1054_v27 }
  0x47   : > { %1009 = vmatpush3.bf16.xpose.msra.mxu1 %v1111_v35 }
  0x4b   : > { %992 = vmatmul.mubr.f32.vlgmr.msra.gmra.mrb[0].mxu0 %v324_v8 }
  0x4e   : > { %1011 = vmatmul.mubr.bf16.vlgmr.msra.gmra.mrb[0].mxu1 %v449_v36 }
  0xa6   : > { %v413_v38 = vpop.xlane.xlu0 %412 }
  0xa7   : > { %v421_v39 = vadd.f32 %v900_v37, %v413_v38 }
 0x11e   : > { %v407_v40 = vpop.f32.mrb[0].mxu0 }
 0x11f   : > { %v422_v41 = vmul.f32 2.0, %v407_v40  ;;  %v993_v42 = vpop.f32.mrb[1].mxu0 }
 0x121   : > { %v423_v43 = vsub.f32 %v421_v39, %v422_v41  ;;  %v548_v51 = vpop.f32.mrb[0].mxu1 }
 0x122   : > { %v555_v52 = vpack.c.bf16 %v548_v51, %v548_v51  ;;  %v1012_v53 = vpop.f32.mrb[1].mxu1 }
 0x123   : > { %v424_v45 = vmax.f32 %v423_v43, 0.0  ;;  %v551_v54 = vpop.f32.mrb[2].mxu1 }
 0x124   : > { %1058 = vmatprep.subr.msk.bf16.mxu0 %vm597_vm1, %v555_v52  ;;  %v599_v55 = vsel %vm597_vm1, %v555_v52, 0  ;;  %v1013_v56 = vpop.f32.mrb[3].mxu1  ;;  %1059 = vmatprep.subr.msk.bf16.mxu1 %vm597_vm1, %v555_v52 }
 0x125   : > { %v432_v46 = vmul.f32 %v901_v44, %v424_v45  ;;  %1015 = vmatpush3.bf16.msra.mxu0 %v599_v55  ;;  %1057 = vmatpush3.bf16.msra.mxu1 %v599_v55 }
 0x127   : > { %v433_v47 = vmul.f32 1.442695, %v432_v46 }
 0x129   : > { %1112 = vpow2.f32 %v433_v47 }
 0x133   : > { %v1113_v49 = vpop.eup %1112 }
 0x134   : > { %v442_v50 = vmul.f32 %v1113_v49, %v902_v48 }
 0x136   : > { %443 = vadd.xlane.f32.xlu0 %v442_v50 }
 0x1c3   : > { %v444_v57 = vpop.xlane.xlu0 %443 }
 0x1c4   : > { %v445_v58 = vadd.f32 1e-08, %v444_v57 }
 0x1c6   : > { %1114 = vrcp.f32 %v445_v58 }
 0x1d0   : > { %v1115_v59 = vpop.eup %1114 }
 0x1d1   : > { %v447_v60 = vmul.f32 %v1115_v59, %v442_v50 }
 0x1d3   : > { %v554_v61 = vpack.c.bf16 %v447_v60, %v447_v60  ;;  %448 = vst [vmem:[%s317_s16] sm:$0xff] %v447_v60 }
 0x1d5   : > { %556 = vxpose.xlu1.c.b16.start.end [1/1] (short) %v554_v61, 128 }
 0x23b   : > { %v564_v62 = vpop.trf.xlu1 }
 0x23c   : > { %1016 = vmatprep.mubr.msk.bf16.mxu0 %vm572_vm2, %v564_v62 }
 0x23f   : > { %v565_v63 = vpop.trf.xlu1 }
 0x240   : > { %1017 = vmatmul.mubr.msk.bf16.vlgmr.msra.gmra.mrb[4].mxu0 %vm572_vm2, %v565_v63 }
 0x243   : > { %v566_v0 = vpop.trf.xlu1 }
 0x244   : > { %1020 = vmatprep.mubr.msk.bf16.mxu0 %vm572_vm2, %v566_v0 }
 0x247   : > { %v567_v1 = vpop.trf.xlu1 }
 0x248   : > { %1021 = vmatmul.mubr.msk.bf16.gmra.mrb[8].mxu0 %vm572_vm2, %v567_v1 }
 0x24b   : > { %v568_v2 = vpop.trf.xlu1 }
 0x24c   : > { %1024 = vmatprep.mubr.msk.bf16.mxu0 %vm572_vm2, %v568_v2 }
 0x24f   : > { %v569_v3 = vpop.trf.xlu1 }
 0x250   : > { %1025 = vmatmul.mubr.msk.bf16.gmra.mrb[12].mxu0 %vm572_vm2, %v569_v3 }
 0x253   : > { %v570_v4 = vpop.trf.xlu1 }
 0x254   : > { %1028 = vmatprep.mubr.msk.bf16.mxu1 %vm572_vm2, %v570_v4 }
 0x257   : > { %v571_v5 = vpop.trf.xlu1 }
 0x258   : > { %1029 = vmatmul.mubr.msk.bf16.vlgmr.msra.gmra.mrb[4].mxu1 %vm572_vm2, %v571_v5 }
 0x313   : > { %v1018_v6 = vpop.f32.mrb[4].mxu0 }
 0x314   : > { %v635_v7 = vpop.f32.mrb[5].mxu0  ;;  %704 = vst [vmem:[%s1253_s22 + $0x10] sm:$0xff] (!%p919_p7), %v1018_v6 }
 0x315   : > { %v1019_v8 = vpop.f32.mrb[6].mxu0  ;;  %702 = vst [vmem:[%s1253_s22] sm:$0xff] (!%p919_p7), %v635_v7 }
 0x316   : > { %v638_v9 = vpop.f32.mrb[7].mxu0  ;;  %705 = vst [vmem:[%s1253_s22 + $0x18] sm:$0xff] (!%p919_p7), %v1019_v8 }
 0x317   : > { %703 = vst [vmem:[%s1253_s22 + $0x8] sm:$0xff] (!%p919_p7), %v638_v9 }
 0x31b   : > { %v1022_v10 = vpop.f32.mrb[8].mxu0 }
 0x31c   : > { %v651_v11 = vpop.f32.mrb[9].mxu0  ;;  %708 = vst [vmem:[%s1253_s22 + $0x30] sm:$0xff] (!%p919_p7), %v1022_v10 }
 0x31d   : > { %v1023_v12 = vpop.f32.mrb[10].mxu0  ;;  %706 = vst [vmem:[%s1253_s22 + $0x20] sm:$0xff] (!%p919_p7), %v651_v11 }
 0x31e   : > { %v654_v13 = vpop.f32.mrb[11].mxu0  ;;  %709 = vst [vmem:[%s1253_s22 + $0x38] sm:$0xff] (!%p919_p7), %v1023_v12 }
 0x31f   : > { %707 = vst [vmem:[%s1253_s22 + $0x28] sm:$0xff] (!%p919_p7), %v654_v13 }
 0x323   : > { %v1026_v14 = vpop.f32.mrb[12].mxu0 }
 0x324   : > { %v667_v15 = vpop.f32.mrb[13].mxu0  ;;  %712 = vst [vmem:[%s1253_s22 + $0x50] sm:$0xff] (!%p919_p7), %v1026_v14 }
 0x325   : > { %v1027_v16 = vpop.f32.mrb[14].mxu0  ;;  %710 = vst [vmem:[%s1253_s22 + $0x40] sm:$0xff] (!%p919_p7), %v667_v15 }
 0x326   : > { %v670_v17 = vpop.f32.mrb[15].mxu0  ;;  %713 = vst [vmem:[%s1253_s22 + $0x58] sm:$0xff] (!%p919_p7), %v1027_v16 }
 0x327   : > { %711 = vst [vmem:[%s1253_s22 + $0x48] sm:$0xff] (!%p919_p7), %v670_v17 }
 0x328   : > { %701 = sbr.rel (%p919_p7) target bundleno = 816 (0x330), region = 48 }
 0x32b   : > { %v1350_v18 = vpop.f32.mrb[4].mxu1 }
 0x32c   : > { %v683_v19 = vpop.f32.mrb[5].mxu1  ;;  %716 = vst [vmem:[%s1253_s22 + $0x70] sm:$0xff] (!%p919_p7), %v1350_v18 }
 0x32d   : > { %v1352_v20 = vpop.f32.mrb[6].mxu1  ;;  %714 = vst [vmem:[%s1253_s22 + $0x60] sm:$0xff] (!%p919_p7), %v683_v19 }
 0x32e   : > { %v686_v21 = vpop.f32.mrb[7].mxu1  ;;  %717 = vst [vmem:[%s1253_s22 + $0x78] sm:$0xff] (!%p919_p7), %v1352_v20 }
 0x32f   : > { %715 = vst [vmem:[%s1253_s22 + $0x68] sm:$0xff] %v686_v21 }
 0x330 PF: > { %p920_p8 = scmp.eq.s32.totalorder %s1138_s24, 0 }
 0x331   : > { %v722_v22 = vld [vmem:[%s1253_s22] sm:$0xff] (!%p920_p8)  ;;  %v723_v23 = vld [vmem:[%s1253_s22 + $0x8] sm:$0xff] (!%p920_p8)  ;;  %v724_v24 = vld [vmem:[%s1253_s22 + $0x10] sm:$0xff] (!%p920_p8) }
 0x332   : > { %721 = sbr.rel (%p920_p8) target bundleno = 828 (0x33c), region = 52  ;;  %v738_v25 = vadd.f32 (!%p920_p8), %v722_v22, %v635_v7  ;;  %v739_v26 = vadd.f32 (!%p920_p8), %v723_v23, %v638_v9  ;;  %v740_v27 = vadd.f32 (!%p920_p8), %v1018_v6, %v724_v24  ;;  %v725_v28 = vld [vmem:[%s1253_s22 + $0x18] sm:$0xff] (!%p920_p8)  ;;  %v726_v29 = vld [vmem:[%s1253_s22 + $0x20] sm:$0xff] (!%p920_p8)  ;;  %v727_v30 = vld [vmem:[%s1253_s22 + $0x28] sm:$0xff] (!%p920_p8) }
 0x333   : > { %v741_v31 = vadd.f32 (!%p920_p8), %v1019_v8, %v725_v28  ;;  %v742_v32 = vadd.f32 (!%p920_p8), %v726_v29, %v651_v11  ;;  %v743_v33 = vadd.f32 (!%p920_p8), %v727_v30, %v654_v13  ;;  %v728_v34 = vld [vmem:[%s1253_s22 + $0x30] sm:$0xff] (!%p920_p8)  ;;  %v729_v35 = vld [vmem:[%s1253_s22 + $0x38] sm:$0xff] (!%p920_p8)  ;;  %v730_v36 = vld [vmem:[%s1253_s22 + $0x40] sm:$0xff] (!%p920_p8) }
 0x334   : > { %754 = vst [vmem:[%s1253_s22] sm:$0xff] (!%p920_p8), %v738_v25  ;;  %755 = vst [vmem:[%s1253_s22 + $0x8] sm:$0xff] (!%p920_p8), %v739_v26  ;;  %v744_v37 = vadd.f32 (!%p920_p8), %v1022_v10, %v728_v34  ;;  %v745_v38 = vadd.f32 (!%p920_p8), %v1023_v12, %v729_v35  ;;  %v746_v39 = vadd.f32 (!%p920_p8), %v730_v36, %v667_v15  ;;  %v731_v40 = vld [vmem:[%s1253_s22 + $0x48] sm:$0xff] (!%p920_p8)  ;;  %v732_v41 = vld [vmem:[%s1253_s22 + $0x50] sm:$0xff] (!%p920_p8) }
 0x335   : > { %756 = vst [vmem:[%s1253_s22 + $0x10] sm:$0xff] (!%p920_p8), %v740_v27  ;;  %v733_v42 = vld [vmem:[%s1253_s22 + $0x58] sm:$0xff] (!%p920_p8)  ;;  %757 = vst [vmem:[%s1253_s22 + $0x18] sm:$0xff] (!%p920_p8), %v741_v31  ;;  %v747_v43 = vadd.f32 (!%p920_p8), %v731_v40, %v670_v17  ;;  %v748_v44 = vadd.f32 (!%p920_p8), %v1026_v14, %v732_v41  ;;  %v734_v46 = vld [vmem:[%s1253_s22 + $0x60] sm:$0xff] (!%p920_p8) }
 0x336   : > { %758 = vst [vmem:[%s1253_s22 + $0x20] sm:$0xff] (!%p920_p8), %v742_v32  ;;  %759 = vst [vmem:[%s1253_s22 + $0x28] sm:$0xff] (!%p920_p8), %v743_v33  ;;  %v749_v45 = vadd.f32 (!%p920_p8), %v1027_v16, %v733_v42  ;;  %v735_v47 = vld [vmem:[%s1253_s22 + $0x68] sm:$0xff] (!%p920_p8)  ;;  %v736_v48 = vld [vmem:[%s1253_s22 + $0x70] sm:$0xff] (!%p920_p8)  ;;  %v750_v49 = vadd.f32 (!%p920_p8), %v734_v46, %v683_v19 }
 0x337   : > { %760 = vst [vmem:[%s1253_s22 + $0x30] sm:$0xff] (!%p920_p8), %v744_v37  ;;  %761 = vst [vmem:[%s1253_s22 + $0x38] sm:$0xff] (!%p920_p8), %v745_v38  ;;  %v751_v50 = vadd.f32 (!%p920_p8), %v735_v47, %v686_v21  ;;  %v752_v51 = vadd.f32 (!%p920_p8), %v1350_v18, %v736_v48  ;;  %v737_v52 = vld [vmem:[%s1253_s22 + $0x78] sm:$0xff] (!%p920_p8) }
 0x338   : > { %762 = vst [vmem:[%s1253_s22 + $0x40] sm:$0xff] (!%p920_p8), %v746_v39  ;;  %763 = vst [vmem:[%s1253_s22 + $0x48] sm:$0xff] (!%p920_p8), %v747_v43  ;;  %v753_v53 = vadd.f32 (!%p920_p8), %v1352_v20, %v737_v52 }
 0x339   : > { %764 = vst [vmem:[%s1253_s22 + $0x50] sm:$0xff] %v748_v44  ;;  %765 = vst [vmem:[%s1253_s22 + $0x58] sm:$0xff] %v749_v45 }
 0x33a   : > { %766 = vst [vmem:[%s1253_s22 + $0x60] sm:$0xff] %v750_v49  ;;  %767 = vst [vmem:[%s1253_s22 + $0x68] sm:$0xff] %v751_v50 }
 0x33b   : > { %768 = vst [vmem:[%s1253_s22 + $0x70] sm:$0xff] %v752_v51  ;;  %769 = vst [vmem:[%s1253_s22 + $0x78] sm:$0xff] %v753_v53 }
 0x33c PF: > { %s18_s28 = sadd.s32 1, %s1154_s28   ;;  %s1431_s24 = smov %s1146_s26 }
 0x33d   : > { %p15_p9 = scmp.ge.s32.totalorder %s18_s28, 6   ;;  %s1432_s25 = smov %s1150_s27 }
 0x33e   : > { %s1433_s26 = smov %s1436_s29  ;;  %s1434_s27 = smov %s1440_s30 }
 0x33f   :  { %17 = sbr.rel (!%p15_p9) target bundleno = 3 (0x3), region = 94 }

// kernel: bio_splatflow_gpt_forward.6
= control target key start
LH: loop header
LB: loop body
LE: loop exit
PB: predicated region body
PF: predicated region fallthrough
CT: control target
= control target key end

     0   :  { %s1948_s21 = smov 0   ;;  %s1950_s22 = smov 0   ;;  %s2289_s0 = inlined_call_operand.vmem [shape: f32[2,16,128], index: 0, kind: input, shape index: {}]   ;;  %s2290_s1 = inlined_call_operand.vmem [shape: f32[2,16,128], index: 1, kind: input, shape index: {}]   ;;  %s2291_s2 = inlined_call_operand.vmem [shape: f32[2,128,128], index: 2, kind: input, shape index: {}]   ;;  %s2292_s3 = inlined_call_operand.vmem [shape: bf16[128,128], index: 3, kind: input, shape index: {}]   ;;  %s2293_s4 = inlined_call_operand.vmem [shape: f32[1,128], index: 4, kind: input, shape index: {}]   ;;  %s2294_s5 = inlined_call_operand.vmem [shape: f32[1,128], index: 5, kind: input, shape index: {}]   ;;  %s2295_s6 = inlined_call_operand.vmem [shape: bf16[512,128], index: 6, kind: input, shape index: {}]   ;;  %s2296_s7 = inlined_call_operand.vmem [shape: f32[1,512], index: 7, kind: input, shape index: {}]   ;;  %s2297_s8 = inlined_call_operand.vmem [shape: bf16[128,512], index: 8, kind: input, shape index: {}]   ;;  %s2298_s9 = inlined_call_operand.vmem [shape: f32[1,128], index: 9, kind: input, shape index: {}]   ;;  %s2299_s10 = inlined_call_operand.vmem [shape: f32[1,128], index: 10, kind: input, shape index: {}]   ;;  %s2300_s11 = inlined_call_operand.vmem [shape: f32[1,128], index: 11, kind: input, shape index: {}]   ;;  %s2301_s12 = inlined_call_operand.vmem [shape: f32[2,16,128], index: 12, kind: output, shape index: {}]  }
   0x1   :  { %s1952_s23 = smov 0   ;;  %s1954_s24 = smov 0  }
   0x2   :  { %s1956_s25 = smov 0  }
   0x3 LB: > { %s31_s26 = sadd.s32 1, %s1871_s23  ;;  %s34_s27 = sadd.s32 1, %s1875_s24  ;;  %s1879_s25 = sphi %s1956_s25, %s22_s25   ;;  %s1875_s24 = sphi %s1954_s24, %s2305_s24   ;;  %s1871_s23 = sphi %s1952_s23, %s2304_s23   ;;  %s1867_s22 = sphi %s1950_s22, %s2303_s22   ;;  %s1863_s21 = sphi %s1948_s21, %s2302_s21  }
   0x4   : > { %p32_p0 = scmp.ge.s32.totalorder %s31_s26, 2  ;;  %p1516_p1 = scmp.ge.s32.totalorder %s1879_s25, 1 }
   0x5   : > { %p406_p2 = scmp.lt.s32.totalorder %s1879_s25, 5 }
   0x6   : > { %s2307_s26 = smov (%p32_p0, %s31_s26), 0  ;;  %s2309_s27 = smov (!%p32_p0, %s34_s27), %s1875_s24 }
   0x7   : > { %p407_p3 = pnand %p1516_p1, %p406_p2  ;;  %p36_p4 = scmp.ge.s32.totalorder %s2309_s27, 2 }
   0x8   : > { %p467_p5 = scmp.lt.s32.totalorder (!%p407_p3), %s1867_s22, 1  ;;  %v1881_v0 = vmov (!%p407_p3), 0.0   ;;  %vm1882_vm0 = vmmov (!%p407_p3), 0   ;;  %v1741_v1 = vld [vmem:[%s2292_s3] sm:$0xff] (!%p407_p3)   ;;  %p469_p6 = scmp.lt.s32.totalorder (!%p407_p3), %s1863_s21, 1  ;;  %v1742_v7 = vld [vmem:[%s2292_s3 + $0x8] sm:$0xff] (!%p407_p3)  }
   0x9   : > { %s2311_s27 = smov (%p36_p4, %s2309_s27), 0  ;;  %410 = sbr.rel (%p407_p3) target bundleno = 1281 (0x501), region = 68 }
   0xa   : > { %1659 = vmatprep.subr.bf16.mxu0 (!%p407_p3), %v1881_v0  ;;  %1675 = vmatprep.mubr.msk.bf16.mxu0 (!%p407_p3), %vm1882_vm0, %v1881_v0  ;;  %v1743_v13 = vld [vmem:[%s2292_s3 + $0x10] sm:$0xff] (!%p407_p3)   ;;  %v1744_v21 = vld [vmem:[%s2292_s3 + $0x18] sm:$0xff] (!%p407_p3)   ;;  %v1745_v28 = vld [vmem:[%s2292_s3 + $0x20] sm:$0xff] (!%p407_p3)  }
   0xb   : > { %1679 = vmatprep.subr.bf16.mxu1 (!%p407_p3), %v1881_v0  ;;  %1695 = vmatprep.mubr.msk.bf16.mxu1 (!%p407_p3), %vm1882_vm0, %v1881_v0  ;;  %v1746_v32 = vld [vmem:[%s2292_s3 + $0x28] sm:$0xff] (!%p407_p3)   ;;  %v1747_v33 = vld [vmem:[%s2292_s3 + $0x30] sm:$0xff] (!%p407_p3)   ;;  %v1748_v34 = vld [vmem:[%s2292_s3 + $0x38] sm:$0xff] (!%p407_p3)  }
   0xc   : > { %1680 = vmatpush3.bf16.xpose.msra.mxu1 (!%p407_p3), %v1741_v1  ;;  %v1749_v40 = vld [vmem:[%s2295_s6 + $0x40] sm:$0xff] (!%p407_p3)   ;;  %v1753_v44 = vld [vmem:[%s2295_s6 + $0x48] sm:$0xff] (!%p407_p3)   ;;  %v1757_v48 = vld [vmem:[%s2295_s6 + $0x50] sm:$0xff] (!%p407_p3)  }
   0xd   : > { %1681 = vmatprep.subr.bf16.mxu1 (!%p407_p3), %v1881_v0  ;;  %v1750_v41 = vld [vmem:[%s2295_s6 + $0xc0] sm:$0xff] (!%p407_p3)   ;;  %v1754_v45 = vld [vmem:[%s2295_s6 + $0xc8] sm:$0xff] (!%p407_p3)   ;;  %v1758_v49 = vld [vmem:[%s2295_s6 + $0xd0] sm:$0xff] (!%p407_p3)  }
   0xe   : > { %v1751_v42 = vld [vmem:[%s2295_s6] sm:$0xff] (!%p407_p3)   ;;  %v1755_v46 = vld [vmem:[%s2295_s6 + $0x8] sm:$0xff] (!%p407_p3)   ;;  %v1759_v50 = vld [vmem:[%s2295_s6 + $0x10] sm:$0xff] (!%p407_p3)  }
   0xf   : > { %v1752_v43 = vld [vmem:[%s2295_s6 + $0x80] sm:$0xff] (!%p407_p3)   ;;  %v1756_v47 = vld [vmem:[%s2295_s6 + $0x88] sm:$0xff] (!%p407_p3)   ;;  %v1760_v51 = vld [vmem:[%s2295_s6 + $0x90] sm:$0xff] (!%p407_p3)  }
  0x10   : > { %s2313_s22 = smov (!%p467_p5, %s1867_s22), 1  ;;  %s2315_s21 = smov (!%p469_p6, %s1863_s21), 1  ;;  %v1761_v52 = vld [vmem:[%s2295_s6 + $0x58] sm:$0xff]   ;;  %v1765_v63 = vld [vmem:[%s2295_s6 + $0x60] sm:$0xff]  }
  0x11   : > { %s1604_s30 = sshll.u32 %s2313_s22, 7  ;;  %s1517_s18 = sshll.u32 %s2313_s22, 1  ;;  %v1762_v53 = vld [vmem:[%s2295_s6 + $0xd8] sm:$0xff]   ;;  %v1767_v1 = vld [vmem:[%s2295_s6 + $0x20] sm:$0xff]  }
  0x12   : > { %s1992_s15 = scalar_lea.vmem %s2291_s2, %s1604_s30  ;;  %s472_s19 = sadd.s32 %s1517_s18, %s2315_s21  ;;  %v1763_v54 = vld [vmem:[%s2295_s6 + $0x18] sm:$0xff]  }
  0x13   : > { %v499_v2 = vld [vmem:[%s1992_s15] sm:$0xff]  ;;  %v500_v3 = vld [vmem:[%s1992_s15 + $0x8] sm:$0xff]  ;;  %v501_v4 = vld [vmem:[%s1992_s15 + $0x10] sm:$0xff]  ;;  %s2012_s22 = sshll.u32 %s472_s19, 3 }
  0x14   : > { %v516_v5 = vpack.c.bf16 %v500_v3, %v499_v2  ;;  %v502_v6 = vld [vmem:[%s1992_s15 + $0x18] sm:$0xff]  ;;  %v503_v9 = vld [vmem:[%s1992_s15 + $0x20] sm:$0xff]  ;;  %v504_v10 = vld [vmem:[%s1992_s15 + $0x28] sm:$0xff]  ;;  %1682 = vmatpush3.bf16.xpose.msra.mxu1 %v1742_v7  ;;  %s482_s14 = scalar_lea.vmem %s2290_s1, %s2012_s22  ;;  %s474_s28 = scalar_lea.vmem %s2289_s0, %s2012_s22 }
  0x15   : > { %v517_v8 = vpack.c.bf16 %v502_v6, %v501_v4  ;;  %1683 = vmatprep.subr.bf16.mxu1 %v1881_v0  ;;  %v518_v11 = vpack.c.bf16 %v504_v10, %v503_v9  ;;  %v505_v12 = vld [vmem:[%s1992_s15 + $0x30] sm:$0xff]  ;;  %v506_v14 = vld [vmem:[%s1992_s15 + $0x38] sm:$0xff]  ;;  %v507_v15 = vld [vmem:[%s1992_s15 + $0x40] sm:$0xff]  ;;  %s495_s30 = scalar_lea.vmem %s2301_s12, %s2012_s22 }
  0x16   : > { %1660 = vmatpush3.bf16.msra.mxu0 %v516_v5  ;;  %v508_v16 = vld [vmem:[%s1992_s15 + $0x48] sm:$0xff]  ;;  %v519_v17 = vpack.c.bf16 %v506_v14, %v505_v12  ;;  %v509_v18 = vld [vmem:[%s1992_s15 + $0x50] sm:$0xff]  ;;  %v510_v19 = vld [vmem:[%s1992_s15 + $0x58] sm:$0xff] }
  0x17   : > { %1661 = vmatprep.subr.bf16.mxu0 %v1881_v0  ;;  %v520_v20 = vpack.c.bf16 %v508_v16, %v507_v15  ;;  %v511_v22 = vld [vmem:[%s1992_s15 + $0x60] sm:$0xff]  ;;  %v512_v23 = vld [vmem:[%s1992_s15 + $0x68] sm:$0xff]  ;;  %v521_v24 = vpack.c.bf16 %v510_v19, %v509_v18  ;;  %v513_v25 = vld [vmem:[%s1992_s15 + $0x70] sm:$0xff] }
  0x18   : > { %v514_v26 = vld [vmem:[%s1992_s15 + $0x78] sm:$0xff]  ;;  %v522_v27 = vpack.c.bf16 %v512_v23, %v511_v22  ;;  %v498_v29 = vld [vmem:[%s482_s14] sm:$0xff]  ;;  %v1769_v3 = vld [vmem:[%s2295_s6 + $0x68] sm:$0xff]  }
  0x19   : > { %v523_v30 = vpack.c.bf16 %v514_v26, %v513_v25  ;;  %v515_v31 = vpack.c.bf16 %v498_v29, %v498_v29  ;;  %v1764_v55 = vld [vmem:[%s2295_s6 + $0x98] sm:$0xff]   ;;  %v497_v56 = vld [vmem:[%s474_s28] sm:$0xff]  ;;  %v1770_v4 = vld [vmem:[%s2295_s6 + $0xe8] sm:$0xff]  }
  0x1a   : > { %1662 = vmatpush3.bf16.msra.mxu0 %v517_v8  ;;  %v1768_v2 = vld [vmem:[%s2295_s6 + $0xa0] sm:$0xff]   ;;  %v1771_v5 = vld [vmem:[%s2295_s6 + $0x28] sm:$0xff]   ;;  %v1773_v7 = vld [vmem:[%s2295_s6 + $0x70] sm:$0xff]  }
  0x1b   : > { %1663 = vmatprep.subr.bf16.mxu0 %v1881_v0  ;;  %v1772_v6 = vld [vmem:[%s2295_s6 + $0xa8] sm:$0xff]   ;;  %v1774_v8 = vld [vmem:[%s2295_s6 + $0xf0] sm:$0xff]   ;;  %v1778_v12 = vld [vmem:[%s2295_s6 + $0xf8] sm:$0xff]  }
  0x1c   : > { %1684 = vmatpush3.bf16.xpose.msra.mxu1 %v1743_v13  ;;  %v1775_v9 = vld [vmem:[%s2295_s6 + $0x30] sm:$0xff]   ;;  %v1779_v13 = vld [vmem:[%s2295_s6 + $0x38] sm:$0xff]   ;;  %v1534_v29 = vld [vmem:[%s2294_s5] ss:$0 sm:$0xff] }
  0x1d   : > { %1685 = vmatprep.subr.bf16.mxu1 %v1881_v0  ;;  %v1776_v10 = vld [vmem:[%s2295_s6 + $0xb0] sm:$0xff]   ;;  %v1780_v14 = vld [vmem:[%s2295_s6 + $0xb8] sm:$0xff]  }
  0x1e   : > { %1664 = vmatpush3.bf16.msra.mxu0 %v518_v11  ;;  %v1777_v11 = vld [vmem:[%s2295_s6 + $0x78] sm:$0xff]   ;;  %v1783_v15 = vld [vmem:[%s2297_s8 + $0x4] ss:$16 sps:$4 sm:$0xff]  }
  0x1f   : > { %1665 = vmatprep.subr.bf16.mxu0 %v1881_v0  ;;  %v1786_v16 = vld [vmem:[%s2297_s8 + $0xc] ss:$16 sps:$4 sm:$0xff]  }
  0x22   : > { %1666 = vmatpush3.bf16.msra.mxu0 %v519_v17 }
  0x23   : > { %1667 = vmatprep.subr.bf16.mxu0 %v1881_v0 }
  0x24   : > { %1686 = vmatpush3.bf16.xpose.msra.mxu1 %v1744_v21 }
  0x25   : > { %1687 = vmatprep.subr.bf16.mxu1 %v1881_v0 }
  0x26   : > { %1668 = vmatpush3.bf16.msra.mxu0 %v520_v20 }
  0x27   : > { %1669 = vmatprep.subr.bf16.mxu0 %v1881_v0 }
  0x2a   : > { %1670 = vmatpush3.bf16.msra.mxu0 %v521_v24 }
  0x2b   : > { %1671 = vmatprep.subr.bf16.mxu0 %v1881_v0 }
  0x2c   : > { %1688 = vmatpush3.bf16.xpose.msra.mxu1 %v1745_v28 }
  0x2d   : > { %1689 = vmatprep.subr.bf16.mxu1 %v1881_v0 }
  0x2e   : > { %1672 = vmatpush3.bf16.msra.mxu0 %v522_v27  ;;  %v1533_v27 = vld [vmem:[%s2293_s4] ss:$0 sm:$0xff] }
  0x2f   : > { %1673 = vmatprep.subr.bf16.mxu0 %v1881_v0 }
  0x32   : > { %1674 = vmatpush3.bf16.msra.mxu0 %v523_v30 }
  0x33   : > { %1623 = vmatprep.subr.bf16.mxu0 %v1749_v40  ;;  %v1798_v40 = vld [vmem:[%s2297_s8 + $0x4c] ss:$16 sps:$4 sm:$0xff]  }
  0x34   : > { %1690 = vmatpush3.bf16.xpose.msra.mxu1 %v1746_v32 }
  0x35   : > { %1676 = vmatmul.mubr.bf16.vlgmr.msra.gmra.mrb[0].mxu0 %v515_v31  ;;  %1691 = vmatprep.subr.bf16.mxu1 %v1881_v0 }
  0x3b   : > { %1624 = vmatpush3.bf16.xpose.msra.mxu0 %v1751_v42  ;;  %v1796_v42 = vld [vmem:[%s2297_s8 + $0x48] ss:$16 sps:$4 sm:$0xff]  }
  0x3c   : > { %1692 = vmatpush3.bf16.xpose.msra.mxu1 %v1747_v33  ;;  %1625 = vmatprep.subr.bf16.mxu0 %v1753_v44  ;;  %v1781_v33 = vld [vmem:[%s2297_s8] ss:$16 sps:$4 sm:$0xff]   ;;  %v1804_v44 = vld [vmem:[%s2297_s8 + $0x6c] ss:$16 sps:$4 sm:$0xff]  }
  0x3d   : > { %1693 = vmatprep.subr.bf16.mxu1 %v1881_v0  ;;  %v1766_v0 = vld [vmem:[%s2295_s6 + $0xe0] sm:$0xff]  }
  0x43   : > { %1626 = vmatpush3.bf16.xpose.msra.mxu0 %v1755_v46  ;;  %v1802_v46 = vld [vmem:[%s2297_s8 + $0x68] ss:$16 sps:$4 sm:$0xff]  }
  0x44   : > { %1694 = vmatpush3.bf16.xpose.msra.mxu1 %v1748_v34  ;;  %1627 = vmatprep.subr.bf16.mxu0 %v1757_v48  ;;  %v1784_v34 = vld [vmem:[%s2297_s8 + $0x8] ss:$16 sps:$4 sm:$0xff]   ;;  %v1810_v48 = vld [vmem:[%s2297_s8 + $0x8c] ss:$16 sps:$4 sm:$0xff]  }
  0x45   : > { %1641 = vmatprep.subr.bf16.mxu1 %v1750_v41  ;;  %v1793_v41 = vld [vmem:[%s2297_s8 + $0x40] ss:$16 sps:$4 sm:$0xff]  }
  0x4b   : > { %1628 = vmatpush3.bf16.xpose.msra.mxu0 %v1759_v50  ;;  %v1808_v50 = vld [vmem:[%s2297_s8 + $0x88] ss:$16 sps:$4 sm:$0xff]  }
  0x4c   : > { %1629 = vmatprep.subr.bf16.mxu0 %v1761_v52  ;;  %v1816_v52 = vld [vmem:[%s2297_s8 + $0xac] ss:$16 sps:$4 sm:$0xff]  }
  0x53   : > { %1630 = vmatpush3.bf16.xpose.msra.mxu0 %v1763_v54  ;;  %v1814_v54 = vld [vmem:[%s2297_s8 + $0xa8] ss:$16 sps:$4 sm:$0xff]  }
  0x54   : > { %1631 = vmatprep.subr.bf16.mxu0 %v1765_v63  ;;  %v767_v63 = vlaneseq }
  0x5b   : > { %1632 = vmatpush3.bf16.xpose.msra.mxu0 %v1767_v1 }
  0x5c   : > { %1633 = vmatprep.subr.bf16.mxu0 %v1769_v3  ;;  %v765_v3 = vld [vmem:[%s2296_s7] sm:$0xf] }
  0x63   : > { %1634 = vmatpush3.bf16.xpose.msra.mxu0 %v1771_v5 }
  0x64   : > { %1635 = vmatprep.subr.bf16.mxu0 %v1773_v7 }
  0x6b   : > { %1636 = vmatpush3.bf16.xpose.msra.mxu0 %v1775_v9 }
  0x6c   : > { %1637 = vmatprep.subr.bf16.mxu0 %v1777_v11 }
  0x73   : > { %1638 = vmatpush3.bf16.xpose.msra.mxu0 %v1779_v13 }
  0x74   : > { %1284 = vmatprep.subr.bf16.mxu0 %v1783_v15 }
 0x108   : > { %v558_v35 = vpop.f32.mrb[0].mxu0 }
 0x109   : > { %v564_v36 = vpack.c.bf16 %v558_v35, %v558_v35  ;;  %v1677_v37 = vpop.f32.mrb[1].mxu0  ;;  %v1789_v35 = vld [vmem:[%s2297_s8 + $0x24] ss:$16 sps:$4 sm:$0xff]  }
 0x10a   : > { %v561_v38 = vpop.f32.mrb[2].mxu0  ;;  %v1787_v37 = vld [vmem:[%s2297_s8 + $0x20] ss:$16 sps:$4 sm:$0xff]  }
 0x10b   : > { %v1678_v39 = vpop.f32.mrb[3].mxu0  ;;  %1696 = vmatmul.mubr.bf16.vlgmr.msra.gmra.mrb[0].mxu1 %v564_v36  ;;  %v1792_v36 = vld [vmem:[%s2297_s8 + $0x2c] ss:$16 sps:$4 sm:$0xff]   ;;  %v1790_v38 = vld [vmem:[%s2297_s8 + $0x28] ss:$16 sps:$4 sm:$0xff]  }
 0x10c   : > { %1642 = vmatpush3.bf16.xpose.msra.mxu1 %v1752_v43  ;;  %v1795_v39 = vld [vmem:[%s2297_s8 + $0x44] ss:$16 sps:$4 sm:$0xff]  }
 0x10d   : > { %1643 = vmatprep.subr.bf16.mxu1 %v1754_v45  ;;  %v1801_v43 = vld [vmem:[%s2297_s8 + $0x64] ss:$16 sps:$4 sm:$0xff]   ;;  %v1799_v45 = vld [vmem:[%s2297_s8 + $0x60] ss:$16 sps:$4 sm:$0xff]  }
 0x114   : > { %1644 = vmatpush3.bf16.xpose.msra.mxu1 %v1756_v47  ;;  %v1807_v47 = vld [vmem:[%s2297_s8 + $0x84] ss:$16 sps:$4 sm:$0xff]  }
 0x115   : > { %1645 = vmatprep.subr.bf16.mxu1 %v1758_v49  ;;  %v1805_v49 = vld [vmem:[%s2297_s8 + $0x80] ss:$16 sps:$4 sm:$0xff]  }
 0x11c   : > { %1646 = vmatpush3.bf16.xpose.msra.mxu1 %v1760_v51  ;;  %v1813_v51 = vld [vmem:[%s2297_s8 + $0xa4] ss:$16 sps:$4 sm:$0xff]  }
 0x11d   : > { %1647 = vmatprep.subr.bf16.mxu1 %v1762_v53  ;;  %v1811_v53 = vld [vmem:[%s2297_s8 + $0xa0] ss:$16 sps:$4 sm:$0xff]  }
 0x124   : > { %1648 = vmatpush3.bf16.xpose.msra.mxu1 %v1764_v55  ;;  %v1819_v55 = vld [vmem:[%s2297_s8 + $0xc4] ss:$16 sps:$4 sm:$0xff]  }
 0x125   : > { %1649 = vmatprep.subr.bf16.mxu1 %v1766_v0  ;;  %v768_v0 = vshrl.u32 %v767_v63, 7 }
 0x127   : > { %v769_v1 = vsub.s32 0, %v768_v0  ;;  %v781_v5 = vsub.s32 3, %v768_v0 }
 0x129   : > { %v782_v9 = vrot.slane %v765_v3, %v781_v5 }
 0x12c   : > { %1650 = vmatpush3.bf16.xpose.msra.mxu1 %v1768_v2  ;;  %v777_v2 = vsub.s32 2, %v768_v0 }
 0x12d   : > { %1651 = vmatprep.subr.bf16.mxu1 %v1770_v4  ;;  %v773_v4 = vsub.s32 1, %v768_v0 }
 0x12e   : > { %v778_v7 = vrot.slane %v765_v3, %v777_v2 }
 0x134   : > { %1652 = vmatpush3.bf16.xpose.msra.mxu1 %v1772_v6  ;;  %v770_v6 = vrot.slane %v765_v3, %v769_v1 }
 0x135   : > { %1653 = vmatprep.subr.bf16.mxu1 %v1774_v8  ;;  %v774_v8 = vrot.slane %v765_v3, %v773_v4 }
 0x13c   : > { %1654 = vmatpush3.bf16.xpose.msra.mxu1 %v1776_v10 }
 0x13d   : > { %1655 = vmatprep.subr.bf16.mxu1 %v1778_v12 }
 0x144   : > { %1656 = vmatpush3.bf16.xpose.msra.mxu1 %v1780_v14 }
 0x145   : > { %1324 = vmatprep.subr.bf16.mxu1 %v1786_v16 }
 0x1de   : > { %v663_v57 = vpop.f32.mrb[0].mxu1 }
 0x1df   : > { %v669_v58 = vadd.f32 %v663_v57, %v497_v56  ;;  %v1697_v59 = vpop.f32.mrb[1].mxu1  ;;  %v1822_v56 = vld [vmem:[%s2297_s8 + $0xcc] ss:$16 sps:$4 sm:$0xff]   ;;  %v1817_v57 = vld [vmem:[%s2297_s8 + $0xc0] ss:$16 sps:$4 sm:$0xff]  }
 0x1e0   : > { %v666_v60 = vpop.f32.mrb[2].mxu1  ;;  %v1825_v59 = vld [vmem:[%s2297_s8 + $0xe4] ss:$16 sps:$4 sm:$0xff]  }
 0x1e1   : > { %v1698_v61 = vpop.f32.mrb[3].mxu1  ;;  %672 = vadd.xlane.f32.xlu0 %v669_v58  ;;  %v675_v62 = vmul.f32 %v669_v58, %v669_v58  ;;  %v1828_v60 = vld [vmem:[%s2297_s8 + $0xec] ss:$16 sps:$4 sm:$0xff]  }
 0x1e2   : > { %v1823_v61 = vld [vmem:[%s2297_s8 + $0xe0] ss:$16 sps:$4 sm:$0xff]  }
 0x1e5   : > { %676 = vadd.xlane.f32.xlu0 %v675_v62  ;;  %v1826_v62 = vld [vmem:[%s2297_s8 + $0xe8] ss:$16 sps:$4 sm:$0xff]  }
 0x26e   : > { %v673_v17 = vpop.xlane.xlu0 %672 }
 0x26f   : > { %v674_v18 = vmul.f32 0.0078125, %v673_v17 }
 0x271   : > { %v679_v20 = vmul.f32 %v674_v18, %v674_v18  ;;  %v682_v25 = vsub.f32 %v669_v58, %v674_v18  ;;  %v1820_v58 = vld [vmem:[%s2297_s8 + $0xc8] ss:$16 sps:$4 sm:$0xff]  }
 0x272   : > { %v677_v19 = vpop.xlane.xlu0 %676 }
 0x273   : > { %v678_v21 = vmul.f32 0.0078125, %v677_v19 }
 0x275   : > { %v680_v22 = vsub.f32 %v678_v21, %v679_v20 }
 0x277   : > { %v681_v23 = vmax.f32 %v680_v22, 0.0 }
 0x279   : > { %v683_v24 = vadd.f32 1e-05, %v681_v23 }
 0x27b   : > { %1829 = vrsqrt.f32 %v683_v24 }
 0x285   : > { %v1830_v26 = vpop.eup %1829 }
 0x286   : > { %v685_v28 = vmul.f32 %v1830_v26, %v682_v25 }
 0x288   : > { %v692_v30 = vmul.f32 %v1533_v27, %v685_v28 }
 0x28a   : > { %v2163_v31 = vadd.f32 %v1534_v29, %v692_v30 }
 0x28c   : > { %v700_v32 = vpack.c.bf16 %v2163_v31, %v2163_v31 }
 0x28e   : > { %1639 = vmatprep.mubr.bf16.mxu0 %v700_v32  ;;  %1657 = vmatprep.mubr.bf16.mxu1 %v700_v32 }
 0x28f   : > { %1640 = vmatmul.mubr.bf16.vlgmr.msra.gmra.mrb[4].mxu0 %v700_v32  ;;  %1658 = vmatmul.mubr.bf16.vlgmr.msra.gmra.mrb[4].mxu1 %v700_v32 }
 0x290   : > { %1285 = vmatpush1.bf16.xpose.msra.mxu0 %v1781_v33  ;;  %1325 = vmatpush1.bf16.xpose.msra.mxu1 %v1784_v34 }
 0x291   : > { %1286 = vmatprep.subr.bf16.mxu0 %v1789_v35  ;;  %1326 = vmatprep.subr.bf16.mxu1 %v1792_v36 }
 0x298   : > { %1287 = vmatpush1.bf16.xpose.msra.mxu0 %v1787_v37  ;;  %1327 = vmatpush1.bf16.xpose.msra.mxu1 %v1790_v38 }
 0x299   : > { %1288 = vmatprep.subr.bf16.mxu0 %v1795_v39  ;;  %1328 = vmatprep.subr.bf16.mxu1 %v1798_v40 }
 0x2a0   : > { %1289 = vmatpush1.bf16.xpose.msra.mxu0 %v1793_v41  ;;  %1329 = vmatpush1.bf16.xpose.msra.mxu1 %v1796_v42 }
 0x2a1   : > { %1290 = vmatprep.subr.bf16.mxu0 %v1801_v43  ;;  %1330 = vmatprep.subr.bf16.mxu1 %v1804_v44 }
 0x2a8   : > { %1291 = vmatpush1.bf16.xpose.msra.mxu0 %v1799_v45  ;;  %1331 = vmatpush1.bf16.xpose.msra.mxu1 %v1802_v46 }
 0x2a9   : > { %1292 = vmatprep.subr.bf16.mxu0 %v1807_v47  ;;  %1332 = vmatprep.subr.bf16.mxu1 %v1810_v48  ;;  %v1567_v47 = vld [vmem:[%s2298_s9] ss:$0 sm:$0xff] }
 0x2b0   : > { %1293 = vmatpush1.bf16.xpose.msra.mxu0 %v1805_v49  ;;  %1333 = vmatpush1.bf16.xpose.msra.mxu1 %v1808_v50 }
 0x2b1   : > { %1294 = vmatprep.subr.bf16.mxu0 %v1813_v51  ;;  %1334 = vmatprep.subr.bf16.mxu1 %v1816_v52 }
 0x2b8   : > { %1295 = vmatpush1.bf16.xpose.msra.mxu0 %v1811_v53  ;;  %1335 = vmatpush1.bf16.xpose.msra.mxu1 %v1814_v54 }
 0x2b9   : > { %1296 = vmatprep.subr.bf16.mxu0 %v1819_v55  ;;  %1336 = vmatprep.subr.bf16.mxu1 %v1822_v56 }
 0x2c0   : > { %1297 = vmatpush1.bf16.xpose.msra.mxu0 %v1817_v57  ;;  %1337 = vmatpush1.bf16.xpose.msra.mxu1 %v1820_v58 }
 0x2c1   : > { %1298 = vmatprep.subr.bf16.mxu0 %v1825_v59  ;;  %1338 = vmatprep.subr.bf16.mxu1 %v1828_v60 }
 0x2c8   : > { %1299 = vmatpush1.bf16.xpose.msra.mxu0 %v1823_v61  ;;  %1339 = vmatpush1.bf16.xpose.msra.mxu1 %v1826_v62 }
 0x362   : > { %v1013_v10 = vpop.f32.mrb[4].mxu0  ;;  %v1054_v11 = vpop.f32.mrb[4].mxu1 }
 0x363   : > { %v1014_v12 = vadd.f32 %v1013_v10, %v770_v6  ;;  %v1055_v13 = vadd.f32 %v1054_v11, %v778_v7  ;;  %v1015_v14 = vpop.f32.mrb[5].mxu0  ;;  %v1056_v15 = vpop.f32.mrb[5].mxu1  ;;  %v1600_v6 = vld [vmem:[%s2299_s10] ss:$0 sm:$0xff] }
 0x364   : > { %v1016_v16 = vadd.f32 %v1015_v14, %v774_v8  ;;  %v1057_v17 = vadd.f32 %v1056_v15, %v782_v9  ;;  %v1017_v18 = vpop.f32.mrb[6].mxu0  ;;  %v1058_v19 = vpop.f32.mrb[6].mxu1  ;;  %v1601_v7 = vld [vmem:[%s2300_s11] ss:$0 sm:$0xff] }
 0x365   : > { %v1065_v20 = vmul.f32 0.70710677, %v1014_v12  ;;  %v1067_v21 = vmul.f32 0.70710677, %v1055_v13  ;;  %v1018_v24 = vpop.f32.mrb[7].mxu0  ;;  %v1059_v25 = vpop.f32.mrb[7].mxu1 }
 0x366   : > { %v1066_v22 = vmul.f32 0.70710677, %v1016_v16  ;;  %v1068_v23 = vmul.f32 0.70710677, %v1057_v17  ;;  %v1061_v30 = vmul.f32 0.5, %v1014_v12  ;;  %v1063_v34 = vmul.f32 0.5, %v1055_v13 }
 0x367   : > { %1831 = verf.f32 %v1065_v20  ;;  %v1062_v35 = vmul.f32 0.5, %v1016_v16  ;;  %v1064_v38 = vmul.f32 0.5, %v1057_v17 }
 0x368   : > { %1833 = verf.f32 %v1067_v21 }
 0x369   : > { %1835 = verf.f32 %v1066_v22 }
 0x36a   : > { %1837 = verf.f32 %v1068_v23 }
 0x371   : > { %v1832_v26 = vpop.eup %1831 }
 0x372   : > { %v1834_v27 = vpop.eup %1833  ;;  %v1073_v28 = vadd.f32 1.0, %v1832_v26 }
 0x373   : > { %v1836_v29 = vpop.eup %1835  ;;  %v1075_v32 = vadd.f32 1.0, %v1834_v27 }
 0x374   : > { %v1838_v33 = vpop.eup %1837  ;;  %v1074_v36 = vadd.f32 1.0, %v1836_v29  ;;  %v1077_v37 = vmul.f32 %v1073_v28, %v1061_v30 }
 0x375   : > { %v1076_v39 = vadd.f32 1.0, %v1838_v33  ;;  %v1079_v40 = vmul.f32 %v1075_v32, %v1063_v34 }
 0x376   : > { %v1078_v41 = vmul.f32 %v1074_v36, %v1062_v35  ;;  %v1081_v44 = vpack.c.bf16 %v1077_v37, %v1077_v37 }
 0x377   : > { %v1080_v42 = vmul.f32 %v1076_v39, %v1064_v38  ;;  %v1083_v46 = vpack.c.bf16 %v1079_v40, %v1079_v40 }
 0x378   : > { %v1082_v43 = vpack.c.bf16 %v1078_v41, %v1078_v41 }
 0x379   : > { %v1084_v45 = vpack.c.bf16 %v1080_v42, %v1080_v42 }
 0x37a   : > { %1316 = vmatprep.mubr.bf16.mxu0 %v1082_v43 }
 0x37b   : > { %1356 = vmatprep.mubr.bf16.mxu1 %v1084_v45  ;;  %1317 = vmatmul.mubr.bf16.vlgmr.msra.gmra.mrb[8].mxu0 %v1081_v44 }
 0x37c   : > { %1357 = vmatmul.mubr.bf16.vlgmr.msra.gmra.mrb[8].mxu1 %v1083_v46 }
 0x44e   : > { %v1318_v48 = vpop.f32.mrb[8].mxu0 }
 0x44f   : > { %v1319_v49 = vadd.f32 %v1567_v47, %v1318_v48  ;;  %v1358_v50 = vpop.f32.mrb[8].mxu1  ;;  %v1320_v51 = vpop.f32.mrb[9].mxu0 }
 0x450   : > { %v1360_v52 = vpop.f32.mrb[9].mxu1  ;;  %v1321_v53 = vpop.f32.mrb[10].mxu0 }
 0x451   : > { %v1359_v54 = vadd.f32 %v1358_v50, %v1319_v49  ;;  %v1361_v55 = vpop.f32.mrb[10].mxu1  ;;  %v1322_v56 = vpop.f32.mrb[11].mxu0 }
 0x452   : > { %v1362_v57 = vpop.f32.mrb[11].mxu1 }
 0x453   : > { %v1364_v58 = vadd.f32 %v1359_v54, %v2163_v31 }
 0x455   : > { %1367 = vadd.xlane.f32.xlu1 %v1364_v58  ;;  %v1370_v59 = vmul.f32 %v1364_v58, %v1364_v58 }
 0x459   : > { %1371 = vadd.xlane.f32.xlu1 %v1370_v59 }
 0x4e2   : > { %v1368_v60 = vpop.xlane.xlu1 %1367 }
 0x4e3   : > { %v1369_v61 = vmul.f32 0.0078125, %v1368_v60 }
 0x4e5   : > { %v1374_v63 = vmul.f32 %v1369_v61, %v1369_v61  ;;  %v1377_v4 = vsub.f32 %v1364_v58, %v1369_v61 }
 0x4e6   : > { %v1372_v62 = vpop.xlane.xlu1 %1371 }
 0x4e7   : > { %v1373_v0 = vmul.f32 0.0078125, %v1372_v62 }
 0x4e9   : > { %v1375_v1 = vsub.f32 %v1373_v0, %v1374_v63 }
 0x4eb   : > { %v1376_v2 = vmax.f32 %v1375_v1, 0.0 }
 0x4ed   : > { %v1378_v3 = vadd.f32 1e-05, %v1376_v2 }
 0x4ef   : > { %1839 = vrsqrt.f32 %v1378_v3 }
 0x4f9   : > { %v1840_v5 = vpop.eup %1839 }
 0x4fa   : > { %v1380_v31 = vmul.f32 %v1840_v5, %v1377_v4 }
 0x4fc   : > { %v1387_v8 = vmul.f32 %v1600_v6, %v1380_v31 }
 0x4fe   : > { %v1394_v9 = vadd.f32 %v1601_v7, %v1387_v8 }
 0x500   : > { %1395 = vst [vmem:[%s495_s30] sm:$0xff] %v1394_v9 }
 0x501 PF: > { %s22_s25 = sadd.s32 1, %s1879_s25   ;;  %s2302_s21 = smov %s1871_s23 }
 0x502   : > { %p19_p7 = scmp.ge.s32.totalorder %s22_s25, 6   ;;  %s2303_s22 = smov %s1875_s24 }
 0x503   : > { %s2304_s23 = smov %s2307_s26  ;;  %s2305_s24 = smov %s2311_s27 }
 0x504   :  { %21 = sbr.rel (!%p19_p7) target bundleno = 3 (0x3), region = 104 }

</bundles_post_ra>
